<compile_context>
chip_gen: v6e
topology: v6e:2x2x1
jax: 0.10.0
libtpu: 0.0.40
codegen_flags: <defaults>
</compile_context>

<pallas_src>
import math
import functools

import jax
import jax.numpy as jnp
from jax.experimental import pallas as pl
from jax.experimental.pallas import tpu as pltpu


def _cdiv(a: int, b: int) -> int:
    return (a + b - 1) // b


def _round_up(a: int, b: int) -> int:
    return _cdiv(a, b) * b


def _fastmmd_kernel(x_ref, y_ref, wx_ref, bx_ref, wy_ref, by_ref, out_ref,
                    wx_bf, wy_bf, sum_x, sum_y, *,
                    c1: float, c2: float, n_x: int, n_y: int, tr: int,
                    nx_steps: int, ny_steps: int, n_steps: int):
    """Row-tiled fused FastMMD forward.

    x_ref   : (tr, D)  f32   current x row tile (zero-padded rows possible)
    y_ref   : (tr, D)  f32   current y row tile (zero-padded rows possible)
    wx_ref  : (D, F)   f32   resident across grid (constant block index)
    bx_ref  : (1, F)   f32   resident
    wy_ref  : (D, F)   f32   resident
    by_ref  : (1, F)   f32   resident
    out_ref : (1, 1)   f32   scalar MMD estimate (SMEM)
    wx_bf/wy_bf : (D, F) bf16 VMEM scratch, c2-scaled weights (filled at i==0)
    sum_x/sum_y : (1, F) f32  VMEM scratch running sums over rows
    """
    i = pl.program_id(0)

    @pl.when(i == 0)
    def _init():
        # Pre-scale by c2 and cast to bf16 once; amortized over all row tiles.
        wx_bf[...] = (jnp.float32(c2) * wx_ref[...]).astype(jnp.bfloat16)
        wy_bf[...] = (jnp.float32(c2) * wy_ref[...]).astype(jnp.bfloat16)
        sum_x[...] = jnp.zeros_like(sum_x)
        sum_y[...] = jnp.zeros_like(sum_y)

    def _accumulate(tile_ref, w_bf, b_ref, acc_ref, n_real):
        # MXU: bf16 operands, f32 accumulation.
        z = jnp.dot(tile_ref[...].astype(jnp.bfloat16), w_bf[...],
                    preferred_element_type=jnp.float32)           # (tr, F) f32
        # EUP cos; epilogue is a single fused add + cos (weights pre-scaled).
        p = jnp.cos(z + b_ref[...])                               # (tr, F) f32
        # Row reduction as a bf16 (1,tr)x(tr,F) MXU dot; the 0/1 v-vector
        # also masks out zero-padded rows (exact in bf16).
        row = i * tr + jax.lax.broadcasted_iota(jnp.int32, (1, tr), 1)
        v = jnp.where(row < n_real, 1.0, 0.0).astype(jnp.bfloat16)  # (1, tr)
        acc_ref[...] += jnp.dot(v, p.astype(jnp.bfloat16),
                                preferred_element_type=jnp.float32)  # (1, F)

    def _acc_x():
        _accumulate(x_ref, wx_bf, bx_ref, sum_x, n_x)

    def _acc_y():
        _accumulate(y_ref, wy_bf, by_ref, sum_y, n_y)

    # Static Python branches: skip the pl.when guard entirely when every grid
    # step carries a real tile for that operand (toy shapes: both branches).
    if nx_steps == n_steps:
        _acc_x()
    else:
        pl.when(i < nx_steps)(_acc_x)
    if ny_steps == n_steps:
        _acc_y()
    else:
        pl.when(i < ny_steps)(_acc_y)

    @pl.when(i == n_steps - 1)
    def _finalize():
        d = jnp.float32(c1) * (sum_x[...] * jnp.float32(1.0 / n_x)
                               - sum_y[...] * jnp.float32(1.0 / n_y))
        out_ref[0, 0] = jnp.sqrt(jnp.sum(d * d))


def fast_mmd(x, y, w_x, b_x, w_y, b_y, *, num_features: int, gamma: float = 1.0,
             row_tile: int = 512):
    """Pallas wrapper reproducing FastMMD.forward(x, y)."""
    # PyTorch: empty inputs are replaced by a single random row.  Shapes are
    # static in JAX, so handle it at trace time in the wrapper.
    if x.size == 0:
        x = jax.random.normal(jax.random.PRNGKey(101), (1, x.shape[1]), jnp.float32)
    if y.size == 0:
        y = jax.random.normal(jax.random.PRNGKey(102), (1, y.shape[1]), jnp.float32)

    x = jnp.asarray(x, jnp.float32)
    y = jnp.asarray(y, jnp.float32)
    N, D = x.shape
    M, Dy = y.shape
    assert D == Dy, "x and y must have the same feature dimension"
    F = num_features
    assert w_x.shape == (D, F) and w_y.shape == (D, F)

    c1 = math.sqrt(2.0 / num_features)
    c2 = math.sqrt(2.0 / (1.0 / gamma))   # == sqrt(2 * gamma)

    # Row tile: multiple of 8 (f32 sublane), never larger than needed.
    row_tile = max(8, _round_up(row_tile, 8))
    tr = min(row_tile, _round_up(max(N, M), 8))
    nx_steps = _cdiv(N, tr)
    ny_steps = _cdiv(M, tr)
    n_steps = max(nx_steps, ny_steps)

    # Zero row-pad only when the batch is not a tile multiple (no-op for the
    # toy shapes); padded rows are masked in-kernel via the v-vector.
    if nx_steps * tr != N:
        x = jnp.pad(x, ((0, nx_steps * tr - N), (0, 0)))
    if ny_steps * tr != M:
        y = jnp.pad(y, ((0, ny_steps * tr - M), (0, 0)))

    w_x = jnp.asarray(w_x, jnp.float32)
    w_y = jnp.asarray(w_y, jnp.float32)
    b_x2 = jnp.asarray(b_x, jnp.float32).reshape(1, F)
    b_y2 = jnp.asarray(b_y, jnp.float32).reshape(1, F)

    if nx_steps == n_steps:
        x_map = lambda i: (i, 0)
    else:
        x_map = lambda i, _s=nx_steps: (jnp.minimum(i, _s - 1), 0)
    if ny_steps == n_steps:
        y_map = lambda i: (i, 0)
    else:
        y_map = lambda i, _s=ny_steps: (jnp.minimum(i, _s - 1), 0)

    kernel = functools.partial(
        _fastmmd_kernel,
        c1=c1, c2=c2, n_x=N, n_y=M, tr=tr,
        nx_steps=nx_steps, ny_steps=ny_steps, n_steps=n_steps)

    grid_spec = pltpu.PrefetchScalarGridSpec(
        num_scalar_prefetch=0,
        grid=(n_steps,),
        in_specs=[
            pl.BlockSpec((tr, D), x_map),                 # x row tile
            pl.BlockSpec((tr, D), y_map),                 # y row tile
            pl.BlockSpec((D, F), lambda i: (0, 0)),       # w_x (resident)
            pl.BlockSpec((1, F), lambda i: (0, 0)),       # b_x (resident)
            pl.BlockSpec((D, F), lambda i: (0, 0)),       # w_y (resident)
            pl.BlockSpec((1, F), lambda i: (0, 0)),       # b_y (resident)
        ],
        out_specs=pl.BlockSpec(memory_space=pltpu.MemorySpace.SMEM),
        scratch_shapes=[
            pltpu.VMEM((D, F), jnp.bfloat16),             # c2-scaled w_x
            pltpu.VMEM((D, F), jnp.bfloat16),             # c2-scaled w_y
            pltpu.VMEM((1, F), jnp.float32),              # sum over x rows
            pltpu.VMEM((1, F), jnp.float32),              # sum over y rows
        ],
    )

    out = pl.pallas_call(
        kernel,
        out_shape=jax.ShapeDtypeStruct((1, 1), jnp.float32),
        grid_spec=grid_spec,
        # Grid axis carries the running-sum accumulators -> "arbitrary".
        # Per-step VMEM is O(tr * F) (~2.5 MiB at tr=512), well under the
        # default scoped limit on every generation, so no vmem_limit override.
        compiler_params=pltpu.CompilerParams(dimension_semantics=("arbitrary",)),
    )(x, y, w_x, b_x2, w_y, b_y2)
    return out[0, 0]


def fast_mmd_reference(x, y, w_x, b_x, w_y, b_y, *, num_features, gamma=1.0):
    """Pure-JAX reference mirroring the kernel numerics (bf16 matmul operands,
    f32 accumulation, f32 epilogue, bf16 row-reduction operands)."""
    c1 = math.sqrt(2.0 / num_features)
    c2 = math.sqrt(2.0 / (1.0 / gamma))

    def mean_psi(a, w, b):
        w_s = (c2 * w).astype(jnp.bfloat16)
        z = jnp.dot(a.astype(jnp.bfloat16), w_s, preferred_element_type=jnp.float32)
        p = jnp.cos(z + b.reshape(1, -1))
        ones = jnp.ones((1, a.shape[0]), jnp.bfloat16)
        s = jnp.dot(ones, p.astype(jnp.bfloat16), preferred_element_type=jnp.float32)
        return s / a.shape[0]

    d = c1 * (mean_psi(x, w_x, b_x) - mean_psi(y, w_y, b_y))
    return jnp.sqrt(jnp.sum(d * d))


if __name__ == "__main__":
    # Small shapes consistent with the module: 2-D inputs [batch, input_dim].
    N, M, D = 8, 8, 32
    NUM_FEATURES = 500        # PyTorch default
    GAMMA = 1.0

    key = jax.random.PRNGKey(0)
    kx, ky, kwx, kbx, kwy, kby = jax.random.split(key, 6)

    x = jax.random.normal(kx, (N, D), jnp.float32)
    y = jax.random.normal(ky, (M, D), jnp.float32)

    # Deterministic stand-ins for the torch.randn / torch.rand draws inside
    # psi(): one independent (w, b) pair per psi call, as in forward().
    c0 = 2.0 * math.pi
    w_x = jax.random.normal(kwx, (D, NUM_FEATURES), jnp.float32)
    b_x = c0 * jax.random.uniform(kbx, (NUM_FEATURES,), jnp.float32)
    w_y = jax.random.normal(kwy, (D, NUM_FEATURES), jnp.float32)
    b_y = c0 * jax.random.uniform(kby, (NUM_FEATURES,), jnp.float32)

    mmd = fast_mmd(x, y, w_x, b_x, w_y, b_y,
                   num_features=NUM_FEATURES, gamma=GAMMA)
    mmd = jax.block_until_ready(mmd)

    ref = fast_mmd_reference(x, y, w_x, b_x, w_y, b_y,
                             num_features=NUM_FEATURES, gamma=GAMMA)
    assert jnp.isfinite(mmd), mmd
    assert jnp.allclose(mmd, ref, rtol=5e-3, atol=5e-4), (mmd, ref)

    print("KERNEL_OK")
</pallas_src>

<mosaic_0001>
module attributes {stable_mosaic.version = 11 : i64} {
  func.func @_fastmmd_kernel(%arg0: i32, %arg1: memref<8x32xf32, #tpu.memory_space<vmem>>, %arg2: memref<8x32xf32, #tpu.memory_space<vmem>>, %arg3: memref<32x500xf32, #tpu.memory_space<vmem>>, %arg4: memref<1x500xf32, #tpu.memory_space<vmem>>, %arg5: memref<32x500xf32, #tpu.memory_space<vmem>>, %arg6: memref<1x500xf32, #tpu.memory_space<vmem>>, %arg7: memref<1x1xf32, #tpu.memory_space<smem>>, %arg8: memref<32x500xbf16, #tpu.memory_space<vmem>>, %arg9: memref<32x500xbf16, #tpu.memory_space<vmem>>, %arg10: memref<1x500xf32, #tpu.memory_space<vmem>>, %arg11: memref<1x500xf32, #tpu.memory_space<vmem>>) attributes {dimension_semantics = [#tpu.dimension_semantics<arbitrary>], iteration_bounds = array<i64: 1>, scalar_prefetch = 0 : i64, scratch_operands = 4 : i64, tpu.core_type = #tpu.core_type<tc>, window_params = [{transform_indices = @transform_0, window_bounds = array<i64: 8, 32>}, {transform_indices = @transform_1, window_bounds = array<i64: 8, 32>}, {pipeline_mode = #tpu.pipeline_mode<synchronous>, transform_indices = @transform_2, window_bounds = array<i64: 32, 500>}, {pipeline_mode = #tpu.pipeline_mode<synchronous>, transform_indices = @transform_3, window_bounds = array<i64: 1, 500>}, {pipeline_mode = #tpu.pipeline_mode<synchronous>, transform_indices = @transform_4, window_bounds = array<i64: 32, 500>}, {pipeline_mode = #tpu.pipeline_mode<synchronous>, transform_indices = @transform_5, window_bounds = array<i64: 1, 500>}, {transform_indices = @transform_6, window_bounds = array<i64: 1, 1>}]} {
    %c0_i32 = arith.constant 0 : i32
    %0 = arith.cmpi eq, %arg0, %c0_i32 : i32
    %1 = arith.extui %0 : i1 to i32
    %c0_i32_0 = arith.constant 0 : i32
    %2 = arith.cmpi ne, %1, %c0_i32_0 : i32
    scf.if %2 {
      %c0_32 = arith.constant 0 : index
      %c0_33 = arith.constant 0 : index
      %52 = vector.load %arg3[%c0_32, %c0_33] : memref<32x500xf32, #tpu.memory_space<vmem>>, vector<32x500xf32>
      %cst_34 = arith.constant 1.41421354 : f32
      %53 = vector.broadcast %cst_34 : f32 to vector<32x500xf32>
      %54 = arith.mulf %53, %52 : vector<32x500xf32>
      %55 = arith.truncf %54 : vector<32x500xf32> to vector<32x500xbf16>
      %c0_35 = arith.constant 0 : index
      %c0_36 = arith.constant 0 : index
      %56 = vector.load %arg8[%c0_35, %c0_36] : memref<32x500xbf16, #tpu.memory_space<vmem>>, vector<32x500xbf16>
      tpu.vector_store %arg8[%c0_35, %c0_36], %55 {strides = array<i32>} : memref<32x500xbf16, #tpu.memory_space<vmem>>, vector<32x500xbf16>,
      %c0_37 = arith.constant 0 : index
      %c0_38 = arith.constant 0 : index
      %57 = vector.load %arg5[%c0_37, %c0_38] : memref<32x500xf32, #tpu.memory_space<vmem>>, vector<32x500xf32>
      %cst_39 = arith.constant 1.41421354 : f32
      %58 = vector.broadcast %cst_39 : f32 to vector<32x500xf32>
      %59 = arith.mulf %58, %57 : vector<32x500xf32>
      %60 = arith.truncf %59 : vector<32x500xf32> to vector<32x500xbf16>
      %c0_40 = arith.constant 0 : index
      %c0_41 = arith.constant 0 : index
      %61 = vector.load %arg9[%c0_40, %c0_41] : memref<32x500xbf16, #tpu.memory_space<vmem>>, vector<32x500xbf16>
      tpu.vector_store %arg9[%c0_40, %c0_41], %60 {strides = array<i32>} : memref<32x500xbf16, #tpu.memory_space<vmem>>, vector<32x500xbf16>,
      %cst_42 = arith.constant 0.000000e+00 : f32
      %62 = vector.broadcast %cst_42 : f32 to vector<1x500xf32>
      %c0_43 = arith.constant 0 : index
      %c0_44 = arith.constant 0 : index
      %63 = vector.load %arg10[%c0_43, %c0_44] : memref<1x500xf32, #tpu.memory_space<vmem>>, vector<1x500xf32>
      tpu.vector_store %arg10[%c0_43, %c0_44], %62 {strides = array<i32>} : memref<1x500xf32, #tpu.memory_space<vmem>>, vector<1x500xf32>,
      %cst_45 = arith.constant 0.000000e+00 : f32
      %64 = vector.broadcast %cst_45 : f32 to vector<1x500xf32>
      %c0_46 = arith.constant 0 : index
      %c0_47 = arith.constant 0 : index
      %65 = vector.load %arg11[%c0_46, %c0_47] : memref<1x500xf32, #tpu.memory_space<vmem>>, vector<1x500xf32>
      tpu.vector_store %arg11[%c0_46, %c0_47], %64 {strides = array<i32>} : memref<1x500xf32, #tpu.memory_space<vmem>>, vector<1x500xf32>,
    } else {
    }
    %c0 = arith.constant 0 : index
    %c0_1 = arith.constant 0 : index
    %3 = vector.load %arg1[%c0, %c0_1] : memref<8x32xf32, #tpu.memory_space<vmem>>, vector<8x32xf32>
    %4 = arith.truncf %3 : vector<8x32xf32> to vector<8x32xbf16>
    %c0_2 = arith.constant 0 : index
    %c0_3 = arith.constant 0 : index
    %5 = vector.load %arg8[%c0_2, %c0_3] : memref<32x500xbf16, #tpu.memory_space<vmem>>, vector<32x500xbf16>
    %cst = arith.constant dense<0.000000e+00> : vector<8x500xf32>
    %6 = tpu.matmul %4, %5, %cst {dimension_numbers = #tpu.dot_dimension_numbers<[1], [0], [0], [1], [0, 0, 1, 1], [], []>} : vector<8x32xbf16>, vector<32x500xbf16>, vector<8x500xf32> -> vector<8x500xf32>
    %c0_4 = arith.constant 0 : index
    %c0_5 = arith.constant 0 : index
    %7 = vector.load %arg4[%c0_4, %c0_5] : memref<1x500xf32, #tpu.memory_space<vmem>>, vector<1x500xf32>
    %8 = vector.broadcast %7 : vector<1x500xf32> to vector<8x500xf32>
    %9 = arith.addf %6, %8 : vector<8x500xf32>
    %10 = math.cos %9 : vector<8x500xf32>
    %c8_i32 = arith.constant 8 : i32
    %11 = arith.muli %arg0, %c8_i32 : i32
    %12 = tpu.iota {dimensions = array<i32: 1>} : vector<1x8xi32>
    %13 = vector.broadcast %11 : i32 to vector<1x8xi32>
    %14 = arith.addi %13, %12 : vector<1x8xi32>
    %c8_i32_6 = arith.constant 8 : i32
    %15 = vector.broadcast %c8_i32_6 : i32 to vector<1x8xi32>
    %16 = arith.cmpi slt, %14, %15 : vector<1x8xi32>
    %cst_7 = arith.constant 1.000000e+00 : f32
    %cst_8 = arith.constant 0.000000e+00 : f32
    %17 = vector.broadcast %cst_7 : f32 to vector<1x8xf32>
    %18 = vector.broadcast %cst_8 : f32 to vector<1x8xf32>
    %19 = arith.select %16, %17, %18 : vector<1x8xi1>, vector<1x8xf32>
    %20 = arith.truncf %19 : vector<1x8xf32> to vector<1x8xbf16>
    %c0_9 = arith.constant 0 : index
    %c0_10 = arith.constant 0 : index
    %21 = vector.load %arg10[%c0_9, %c0_10] : memref<1x500xf32, #tpu.memory_space<vmem>>, vector<1x500xf32>
    %22 = arith.truncf %10 : vector<8x500xf32> to vector<8x500xbf16>
    %cst_11 = arith.constant dense<0.000000e+00> : vector<1x500xf32>
    %23 = tpu.matmul %20, %22, %cst_11 {dimension_numbers = #tpu.dot_dimension_numbers<[1], [0], [0], [1], [0, 0, 1, 1], [], []>} : vector<1x8xbf16>, vector<8x500xbf16>, vector<1x500xf32> -> vector<1x500xf32>
    %24 = arith.addf %21, %23 : vector<1x500xf32>
    %c0_12 = arith.constant 0 : index
    %c0_13 = arith.constant 0 : index
    %25 = vector.load %arg10[%c0_12, %c0_13] : memref<1x500xf32, #tpu.memory_space<vmem>>, vector<1x500xf32>
    tpu.vector_store %arg10[%c0_12, %c0_13], %24 {strides = array<i32>} : memref<1x500xf32, #tpu.memory_space<vmem>>, vector<1x500xf32>,
    %c0_14 = arith.constant 0 : index
    %c0_15 = arith.constant 0 : index
    %26 = vector.load %arg2[%c0_14, %c0_15] : memref<8x32xf32, #tpu.memory_space<vmem>>, vector<8x32xf32>
    %27 = arith.truncf %26 : vector<8x32xf32> to vector<8x32xbf16>
    %c0_16 = arith.constant 0 : index
    %c0_17 = arith.constant 0 : index
    %28 = vector.load %arg9[%c0_16, %c0_17] : memref<32x500xbf16, #tpu.memory_space<vmem>>, vector<32x500xbf16>
    %cst_18 = arith.constant dense<0.000000e+00> : vector<8x500xf32>
    %29 = tpu.matmul %27, %28, %cst_18 {dimension_numbers = #tpu.dot_dimension_numbers<[1], [0], [0], [1], [0, 0, 1, 1], [], []>} : vector<8x32xbf16>, vector<32x500xbf16>, vector<8x500xf32> -> vector<8x500xf32>
    %c0_19 = arith.constant 0 : index
    %c0_20 = arith.constant 0 : index
    %30 = vector.load %arg6[%c0_19, %c0_20] : memref<1x500xf32, #tpu.memory_space<vmem>>, vector<1x500xf32>
    %31 = vector.broadcast %30 : vector<1x500xf32> to vector<8x500xf32>
    %32 = arith.addf %29, %31 : vector<8x500xf32>
    %33 = math.cos %32 : vector<8x500xf32>
    %c8_i32_21 = arith.constant 8 : i32
    %34 = arith.muli %arg0, %c8_i32_21 : i32
    %35 = tpu.iota {dimensions = array<i32: 1>} : vector<1x8xi32>
    %36 = vector.broadcast %34 : i32 to vector<1x8xi32>
    %37 = arith.addi %36, %35 : vector<1x8xi32>
    %c8_i32_22 = arith.constant 8 : i32
    %38 = vector.broadcast %c8_i32_22 : i32 to vector<1x8xi32>
    %39 = arith.cmpi slt, %37, %38 : vector<1x8xi32>
    %cst_23 = arith.constant 1.000000e+00 : f32
    %cst_24 = arith.constant 0.000000e+00 : f32
    %40 = vector.broadcast %cst_23 : f32 to vector<1x8xf32>
    %41 = vector.broadcast %cst_24 : f32 to vector<1x8xf32>
    %42 = arith.select %39, %40, %41 : vector<1x8xi1>, vector<1x8xf32>
    %43 = arith.truncf %42 : vector<1x8xf32> to vector<1x8xbf16>
    %c0_25 = arith.constant 0 : index
    %c0_26 = arith.constant 0 : index
    %44 = vector.load %arg11[%c0_25, %c0_26] : memref<1x500xf32, #tpu.memory_space<vmem>>, vector<1x500xf32>
    %45 = arith.truncf %33 : vector<8x500xf32> to vector<8x500xbf16>
    %cst_27 = arith.constant dense<0.000000e+00> : vector<1x500xf32>
    %46 = tpu.matmul %43, %45, %cst_27 {dimension_numbers = #tpu.dot_dimension_numbers<[1], [0], [0], [1], [0, 0, 1, 1], [], []>} : vector<1x8xbf16>, vector<8x500xbf16>, vector<1x500xf32> -> vector<1x500xf32>
    %47 = arith.addf %44, %46 : vector<1x500xf32>
    %c0_28 = arith.constant 0 : index
    %c0_29 = arith.constant 0 : index
    %48 = vector.load %arg11[%c0_28, %c0_29] : memref<1x500xf32, #tpu.memory_space<vmem>>, vector<1x500xf32>
    tpu.vector_store %arg11[%c0_28, %c0_29], %47 {strides = array<i32>} : memref<1x500xf32, #tpu.memory_space<vmem>>, vector<1x500xf32>,
    %c0_i32_30 = arith.constant 0 : i32
    %49 = arith.cmpi eq, %arg0, %c0_i32_30 : i32
    %50 = arith.extui %49 : i1 to i32
    %c0_i32_31 = arith.constant 0 : i32
    %51 = arith.cmpi ne, %50, %c0_i32_31 : i32
    scf.if %51 {
      %c0_32 = arith.constant 0 : index
      %c0_33 = arith.constant 0 : index
      %52 = vector.load %arg10[%c0_32, %c0_33] : memref<1x500xf32, #tpu.memory_space<vmem>>, vector<1x500xf32>
      %cst_34 = arith.constant 1.250000e-01 : f32
      %53 = vector.broadcast %cst_34 : f32 to vector<1x500xf32>
      %54 = arith.mulf %52, %53 : vector<1x500xf32>
      %c0_35 = arith.constant 0 : index
      %c0_36 = arith.constant 0 : index
      %55 = vector.load %arg11[%c0_35, %c0_36] : memref<1x500xf32, #tpu.memory_space<vmem>>, vector<1x500xf32>
      %cst_37 = arith.constant 1.250000e-01 : f32
      %56 = vector.broadcast %cst_37 : f32 to vector<1x500xf32>
      %57 = arith.mulf %55, %56 : vector<1x500xf32>
      %58 = arith.subf %54, %57 : vector<1x500xf32>
      %cst_38 = arith.constant 0.0632455498 : f32
      %59 = vector.broadcast %cst_38 : f32 to vector<1x500xf32>
      %60 = arith.mulf %59, %58 : vector<1x500xf32>
      %61 = arith.mulf %60, %60 : vector<1x500xf32>
      %62 = vector.shape_cast %61 : vector<1x500xf32> to vector<1x1x500xf32>
      %cst_39 = arith.constant dense<0.000000e+00> : vector<1xf32>
      %63 = vector.multi_reduction <add>, %62, %cst_39 [1, 2] : vector<1x1x500xf32> to vector<1xf32>
      %64 = vector.shape_cast %63 : vector<1xf32> to vector<1x1x1xf32>
      %65 = vector.extract %64[0, 0, 0] : f32 from vector<1x1x1xf32>
      %66 = math.sqrt %65 : f32
      %c0_40 = arith.constant 0 : index
      %c0_41 = arith.constant 0 : index
      %67 = memref.load %arg7[%c0_40, %c0_41] : memref<1x1xf32, #tpu.memory_space<smem>>
      memref.store %66, %arg7[%c0_40, %c0_41] : memref<1x1xf32, #tpu.memory_space<smem>>
    } else {
    }
    return
  }
  func.func @transform_0(%arg0: i32) -> (i32, i32) {
    %c0_i32 = arith.constant 0 : i32
    %c0_i32_0 = arith.constant 0 : i32
    return %arg0, %c0_i32 : i32, i32
  }
  func.func @transform_1(%arg0: i32) -> (i32, i32) {
    %c0_i32 = arith.constant 0 : i32
    %c0_i32_0 = arith.constant 0 : i32
    return %arg0, %c0_i32 : i32, i32
  }
  func.func @transform_2(%arg0: i32) -> (i32, i32) {
    %c0_i32 = arith.constant 0 : i32
    %c0_i32_0 = arith.constant 0 : i32
    %c0_i32_1 = arith.constant 0 : i32
    return %c0_i32, %c0_i32_0 : i32, i32
  }
  func.func @transform_3(%arg0: i32) -> (i32, i32) {
    %c0_i32 = arith.constant 0 : i32
    %c0_i32_0 = arith.constant 0 : i32
    %c0_i32_1 = arith.constant 0 : i32
    return %c0_i32, %c0_i32_0 : i32, i32
  }
  func.func @transform_4(%arg0: i32) -> (i32, i32) {
    %c0_i32 = arith.constant 0 : i32
    %c0_i32_0 = arith.constant 0 : i32
    %c0_i32_1 = arith.constant 0 : i32
    return %c0_i32, %c0_i32_0 : i32, i32
  }
  func.func @transform_5(%arg0: i32) -> (i32, i32) {
    %c0_i32 = arith.constant 0 : i32
    %c0_i32_0 = arith.constant 0 : i32
    %c0_i32_1 = arith.constant 0 : i32
    return %c0_i32, %c0_i32_0 : i32, i32
  }
  func.func @transform_6(%arg0: i32) -> (i32, i32) {
    %c0_i32 = arith.constant 0 : i32
    %c0_i32_0 = arith.constant 0 : i32
    %c0_i32_1 = arith.constant 0 : i32
    return %c0_i32, %c0_i32_0 : i32, i32
  }
}

</mosaic_0001>

<bundles_post_ra>
// kernel: tpu_custom_call.1
= control target key start
LH: loop header
LB: loop body
LE: loop exit
PB: predicated region body
PF: predicated region fallthrough
CT: control target
= control target key end

     0   :  { %11 = vsyncpa [#allocation7], 0  ;;  %s2906_s0 = inlined_call_operand.hbm [shape: f32[8,32], index: 0, kind: input, shape index: {}]   ;;  %s2907_s1 = inlined_call_operand.hbm [shape: f32[8,32], index: 1, kind: input, shape index: {}]   ;;  %s2908_s2 = inlined_call_operand.hbm [shape: f32[32,500], index: 2, kind: input, shape index: {}]   ;;  %s2909_s3 = inlined_call_operand.vmem [shape: f32[1,500], index: 3, kind: input, shape index: {}]   ;;  %s2910_s4 = inlined_call_operand.hbm [shape: f32[32,500], index: 4, kind: input, shape index: {}]   ;;  %s2911_s5 = inlined_call_operand.vmem [shape: f32[1,500], index: 5, kind: input, shape index: {}]   ;;  %s2912_s6 = inlined_call_operand.hbm [shape: f32[1,1], index: 6, kind: output, shape index: {}]  }
   0x1   :  { %12 = vsyncpa [#allocation10], 0 }
   0x2   :  { %13 = vsyncpa [#allocation13], 0 }
   0x3   :  { %14 = vsyncpa [#allocation8], 0  ;;  %s2051_s21 = smov [#allocation9]   ;;  %s2052_s23 = smov [#allocation6]  }
   0x4   :  { %s31_s22 = sshll.u32 %s2051_s21, 4  ;;  %s21_s24 = sshll.u32 %s2052_s23, 4  ;;  %s32_s22 = int_to_ptr.vmem [resolvable:$true] %s31_s22  ;;  %s22_s24 = int_to_ptr.vmem [resolvable:$true] %s21_s24 }
   0x5   :  { %s1963_s25 = scalar_lea.vmem %s32_s22, 128  ;;  %p1968_p1 = scmp.lt.s32.totalorder %s32_s22, %s32_s22 }
   0x6   :  { %p1964_p0 = scmp.ne.s32.totalorder %s32_s22, %s1963_s25  ;;  %p1969_p2 = scmp.lt.s32.totalorder %s1963_s25, %s1963_s25 }
   0x8   :  { %p1970_p3 = por %p1969_p2, %p1968_p1 }
   0xa   :  { %p1971_p4 = pnand %p1970_p3, %p1964_p0 }
   0xc   :  { %1974 = shalt.err (!%p1971_p4)
}
   0xd   :  { %34 = dma.hbm_to_vmem [thread:$0]  %s2907_s1, 128, %s32_s22, [#allocation10]  }
   0xe   :  { %s1983_s28 = scalar_lea.vmem %s22_s24, 128  ;;  %p1988_p6 = scmp.lt.s32.totalorder %s22_s24, %s22_s24 }
   0xf   :  { %p1984_p5 = scmp.ne.s32.totalorder %s22_s24, %s1983_s28  ;;  %p1989_p7 = scmp.lt.s32.totalorder %s1983_s28, %s1983_s28 }
  0x11   :  { %p1990_p8 = por %p1989_p7, %p1988_p6 }
  0x13   :  { %p1991_p9 = pnand %p1990_p8, %p1984_p5 }
  0x15   :  { %1994 = shalt.err (!%p1991_p9)
}
  0x16   :  { %24 = dma.hbm_to_vmem [thread:$0]  %s2906_s0, 128, %s22_s24, [#allocation7]  }
  0x17   :  { %s2053_s7 = smov [#allocation11]  }
  0x18   :  { %s40_s8 = sshll.u32 %s2053_s7, 4  ;;  %s41_s8 = int_to_ptr.vmem [resolvable:$true] %s40_s8 }
  0x19   :  { %s2003_s9 = scalar_lea.vmem %s41_s8, 2048  ;;  %p2008_p11 = scmp.lt.s32.totalorder %s41_s8, %s41_s8 }
  0x1a   :  { %p2004_p10 = scmp.ne.s32.totalorder %s41_s8, %s2003_s9  ;;  %p2009_p12 = scmp.lt.s32.totalorder %s2003_s9, %s2003_s9 }
  0x1c   :  { %p2010_p13 = por %p2009_p12, %p2008_p11 }
  0x1e   :  { %p2011_p0 = pnand %p2010_p13, %p2004_p10 }
  0x20   :  { %2014 = shalt.err (!%p2011_p0)
}
  0x21   :  { %s2054_s1 = smov 512   ;;  %s2055_s10 = smov 32  }
  0x22   :  { %46 = dma.hbm_to_vmem [thread:$0]  %s2908_s2, 2048, %s41_s8, [#allocation10], %s2054_s1, %s2054_s1, %s2055_s10  }
  0x23   :  { %s2056_s13 = smov [#allocation12]  }
  0x24   :  { %s54_s14 = sshll.u32 %s2056_s13, 4  ;;  %s55_s14 = int_to_ptr.vmem [resolvable:$true] %s54_s14 }
  0x25   :  { %s2023_s0 = scalar_lea.vmem %s55_s14, 2048  ;;  %p2028_p2 = scmp.lt.s32.totalorder %s55_s14, %s55_s14 }
  0x26   :  { %p2024_p1 = scmp.ne.s32.totalorder %s55_s14, %s2023_s0  ;;  %p2029_p3 = scmp.lt.s32.totalorder %s2023_s0, %s2023_s0 }
  0x28   :  { %p2030_p4 = por %p2029_p3, %p2028_p2 }
  0x2a   :  { %p2031_p5 = pnand %p2030_p4, %p2024_p1 }
  0x2c   :  { %2034 = shalt.err (!%p2031_p5)
}
  0x2d   :  { %60 = dma.hbm_to_vmem [thread:$0]  %s2910_s4, 2048, %s55_s14, [#allocation13], %s2054_s1, %s2054_s1, %s2055_s10  }
  0x2e   :  { %2043 = dma.done.wait [#allocation7], 128  }
  0x2f   :  { %2044 = vsyncadd [#allocation7], 4294967168 }
  0x30   :  { %2045 = dma.done.wait [#allocation10], 2176  }
  0x31   :  { %2046 = vsyncadd [#allocation10], 4294965120 }
  0x32   :  { %2047 = dma.done.wait [#allocation13], 2048  }
  0x33   :  { %2048 = vsyncadd [#allocation13], 4294965248  ;;  %v2057_v0 = vmov 0   ;;  %v88_v1 = vld [vmem:[#allocation11 + $0x40] sm:$0xff]  ;;  %v89_v2 = vld [vmem:[#allocation11 + $0x48] sm:$0xff]  ;;  %vm161_vm0 = vcmask 1043456   ;;  %v259_v48 = vlaneseq }
  0x34   :  { %373 = vmatprep.mubr.bf16.mxu0 %v2057_v0  ;;  %414 = vmatprep.mubr.bf16.mxu1 %v2057_v0  ;;  %v92_v3 = vld [vmem:[#allocation11 + $0x60] sm:$0xff]  ;;  %vm162_vm1 = vcmask 949252   ;;  %v93_v4 = vld [vmem:[#allocation11 + $0x68] sm:$0xff]  ;;  %v104_v5 = vmul.f32 1.4142135, %v88_v1  ;;  %v90_v7 = vld [vmem:[#allocation11 + $0x50] sm:$0xff] }
  0x35   :  { %v105_v6 = vmul.f32 1.4142135, %v89_v2  ;;  %v108_v8 = vmul.f32 1.4142135, %v92_v3  ;;  %v109_v9 = vmul.f32 1.4142135, %v93_v4  ;;  %vm2118_vm2 = vmor %vm162_vm1, %vm161_vm0 }
  0x36   :  { %v91_v10 = vld [vmem:[#allocation11 + $0x58] sm:$0xff]  ;;  %v94_v11 = vld [vmem:[#allocation11 + $0x70] sm:$0xff]  ;;  %v106_v13 = vmul.f32 1.4142135, %v90_v7  ;;  %v80_v15 = vld [vmem:[#allocation11] sm:$0xff]  ;;  %vm337_vm3 = vcmask 261120  }
  0x37   :  { %v95_v12 = vld [vmem:[#allocation11 + $0x78] sm:$0xff]  ;;  %v107_v14 = vmul.f32 1.4142135, %v91_v10  ;;  %v110_v16 = vmul.f32 1.4142135, %v94_v11  ;;  %v81_v19 = vld [vmem:[#allocation11 + $0x8] sm:$0xff]  ;;  %v1947_v26 = vpack.c.bf16 %v109_v9, %v105_v6  ;;  %v1948_v28 = vpack.c.bf16 %v108_v8, %v104_v5 }
  0x38   :  { %v111_v17 = vmul.f32 1.4142135, %v95_v12  ;;  %v84_v20 = vld [vmem:[#allocation11 + $0x20] sm:$0xff]  ;;  %v85_v22 = vld [vmem:[#allocation11 + $0x28] sm:$0xff]  ;;  %v96_v23 = vmul.f32 1.4142135, %v80_v15 }
  0x39   :  { %v1838_v21 = vpack.c.bf16 %v107_v14, %v106_v13  ;;  %v97_v24 = vmul.f32 1.4142135, %v81_v19  ;;  %v82_v25 = vld [vmem:[#allocation11 + $0x10] sm:$0xff]  ;;  %v100_v29 = vmul.f32 1.4142135, %v84_v20  ;;  %v83_v30 = vld [vmem:[#allocation11 + $0x18] sm:$0xff]  ;;  %353 = vmatprep.subr.bf16.mxu0 %v1947_v26 }
  0x3a   :  { %v1840_v27 = vpack.c.bf16 %v111_v17, %v110_v16  ;;  %v86_v31 = vld [vmem:[#allocation11 + $0x30] sm:$0xff]  ;;  %v87_v32 = vld [vmem:[#allocation11 + $0x38] sm:$0xff]  ;;  %v101_v33 = vmul.f32 1.4142135, %v85_v22  ;;  %v98_v34 = vmul.f32 1.4142135, %v82_v25  ;;  %354 = vmatpush1.bf16.msra.mxu0 %v1948_v28 }
  0x3b   :  { %168 = vst.msk [vmem:[#allocation2 + $0x28] sm:$0xff] %vm2118_vm2, %v1838_v21  ;;  %v99_v35 = vmul.f32 1.4142135, %v83_v30  ;;  %v102_v36 = vmul.f32 1.4142135, %v86_v31  ;;  %v265_v40 = vld [vmem:[#allocation6] sm:$0xff]  ;;  %v1950_v42 = vpack.c.bf16 %v100_v29, %v96_v23 }
  0x3c   :  { %170 = vst.msk [vmem:[#allocation2 + $0x38] sm:$0xff] %vm2118_vm2, %v1840_v27  ;;  %v103_v37 = vmul.f32 1.4142135, %v87_v32  ;;  %v1949_v41 = vpack.c.bf16 %v101_v33, %v97_v24  ;;  %v266_v43 = vpack.c.bf16 %v265_v40, %v265_v40  ;;  %v2135_v49 = vshrl.u32 %v259_v48, 7  ;;  %v2143_v51 = vld [vmem:[%s2909_s3] sm:$0xf] }
  0x3d   :  { %v1834_v38 = vpack.c.bf16 %v99_v35, %v98_v34  ;;  %v2058_v30 = vmov 683565275   ;;  %v2059_v32 = vmov 2475754826   ;;  %v2060_v34 = vmov 2131351028  }
  0x3e   :  { %v1836_v39 = vpack.c.bf16 %v103_v37, %v102_v36  ;;  %355 = vmatprep.subr.bf16.mxu0 %v1949_v41  ;;  %v2138_v50 = vsub.s32 0, %v2135_v49  ;;  %v2146_v52 = vsub.s32 1, %v2135_v49  ;;  %v2155_v57 = vsub.s32 2, %v2135_v49  ;;  %s2066_s19 = smov [#allocation14]  }
  0x3f   :  { %164 = vst.msk [vmem:[#allocation2 + $0x8] sm:$0xff] %vm2118_vm2, %v1834_v38  ;;  %356 = vmatpush1.bf16.msra.mxu0 %v1950_v42  ;;  %v2170_v11 = vsub.s32 3, %v2135_v49  ;;  %v2061_v36 = vmov 2102212464   ;;  %v2062_v38 = vmov 920167782  }
  0x40   :  { %166 = vst.msk [vmem:[#allocation2 + $0x18] sm:$0xff] %vm2118_vm2, %v1836_v39  ;;  %v280_v53 = vrot.slane %v2143_v51, %v2138_v50  ;;  %v284_v54 = vrot.slane %v2143_v51, %v2146_v52  ;;  %v288_v1 = vrot.slane %v2143_v51, %v2155_v57 }
  0x41   :  { %v292_v23 = vrot.slane %v2143_v51, %v2170_v11 }
  0x42   :  { %1781 = vmatmul.mubr.msk.bf16.vlgmr.msra.gmra.mxu0 %vm337_vm3, %v266_v43 }
  0x43   :  { %v1901_v44 = vld [vmem:[#allocation2 + $0x2c] ss:$16 sps:$4 sm:$0xff]   ;;  %v1903_v45 = vld [vmem:[#allocation2 + $0x28] ss:$16 sps:$4 sm:$0xff]   ;;  %897 = vmatprep.mubr.bf16.mxu0 %v2057_v0 }
  0x44   :  { %394 = vmatprep.subr.bf16.mxu1 %v1901_v44 }
  0x45   :  { %395 = vmatpush1.bf16.msra.mxu1 %v1903_v45 }
  0x47   :  { %v1904_v46 = vld [vmem:[#allocation2 + $0xc] ss:$16 sps:$4 sm:$0xff]   ;;  %v1906_v47 = vld [vmem:[#allocation2 + $0x8] ss:$16 sps:$4 sm:$0xff]  }
  0x48   :  { %396 = vmatprep.subr.bf16.mxu1 %v1904_v46  ;;  %v2063_v46 = vmov 1326507024  }
  0x49   :  { %397 = vmatpush1.bf16.msra.mxu1 %v1906_v47 }
  0x4c   :  { %1782 = vmatmul.mubr.msk.bf16.vlgmr.msra.gmra.mxu1 %vm337_vm3, %v266_v43 }
  0x4d   :  { %938 = vmatprep.mubr.bf16.mxu1 %v2057_v0 }
 0x102   :  { %v375_v55 = vpop.f32.mrf.mxu0 }
 0x103   :  { %v2152_v56 = vadd.f32 %v375_v55, %v280_v53 }
 0x104   :  { %v377_v58 = vpop.f32.mrf.mxu0 }
 0x105   :  { %v423_v59 = vand.u32 2147483647, %v2152_v56  ;;  %v426_v60 = vand.u32 2139095040, %v2152_v56  ;;  %v2159_v61 = vadd.f32 %v377_v58, %v284_v54 }
 0x106   :  { %v379_v62 = vpop.f32.mrf.mxu0 }
 0x107   :  { %v427_v63 = vshrl.u32 %v426_v60, 23  ;;  %v430_v2 = vand.u32 8388607, %v423_v59  ;;  %v526_v3 = vand.u32 2147483647, %v2159_v61  ;;  %v529_v4 = vand.u32 2139095040, %v2159_v61 }
 0x108   :  { %v380_v5 = vpop.f32.mrf.mxu0 }
 0x109   :  { %v1783_v6 = vadd.s32 4294967169, %v427_v63  ;;  %v530_v8 = vshrl.u32 %v529_v4, 23  ;;  %v431_v12 = vor.u32 8388608, %v430_v2  ;;  %v2174_v14 = vand.u32 8388607, %v526_v3 }
 0x10b   :  { %v433_v9 = vadd.s32 1, %v1783_v6  ;;  %v1787_v13 = vadd.s32 4294967169, %v530_v8  ;;  %v2182_v24 = vshll.u32 %v431_v12, 8  ;;  %v534_v26 = vor.u32 8388608, %v2174_v14 }
 0x10c   :  { %v416_v7 = vpop.f32.mrf.mxu1 }
 0x10d   :  { %v2167_v10 = vadd.f32 %v416_v7, %v288_v1  ;;  %vm434_vm4 = vcmp.gt.s32.totalorder %v433_v9, 0  ;;  %v536_v27 = vadd.s32 1, %v1787_v13 }
 0x10e   :  { %v2176_v15 = vpop.f32.mrf.mxu1  ;;  %v435_v17 = vsel %vm434_vm4, %v433_v9, 0 }
 0x10f   :  { %v632_v16 = vand.u32 2139095040, %v2167_v10  ;;  %v629_v19 = vand.u32 2147483647, %v2167_v10  ;;  %v436_v21 = vshrl.u32 %v435_v17, 5  ;;  %v437_v22 = vand.u32 31, %v435_v17 }
 0x110   :  { %v420_v20 = vpop.f32.mrf.mxu1  ;;  %vm537_vm9 = vcmp.gt.s32.totalorder %v536_v27, 0 }
 0x111   :  { %v633_v25 = vshrl.u32 %v632_v16, 23  ;;  %v438_v29 = vsub.s32 32, %v437_v22  ;;  %v440_v31 = vshll.u32 %v2058_v30, %v437_v22  ;;  %v443_v33 = vshll.u32 %v2059_v32, %v437_v22 }
 0x112   :  { %v421_v28 = vpop.f32.mrf.mxu1  ;;  %v446_v35 = vshll.u32 %v2060_v34, %v437_v22  ;;  %v449_v37 = vshll.u32 %v2061_v36, %v437_v22  ;;  %v452_v39 = vshll.u32 %v2062_v38, %v437_v22  ;;  %vm455_vm5 = vcmp.lt.s32.totalorder %v436_v21, 1 }
 0x113   :  { %v636_v40 = vand.u32 8388607, %v629_v19  ;;  %v439_v41 = vshrl.u32 %v2058_v30, %v438_v29  ;;  %v441_v42 = vshrl.u32 %v2059_v32, %v438_v29  ;;  %v444_v43 = vshrl.u32 %v2060_v34, %v438_v29 }
 0x114   :  { %v447_v44 = vshrl.u32 %v2061_v36, %v438_v29  ;;  %v450_v45 = vshrl.u32 %v2062_v38, %v438_v29  ;;  %v453_v47 = vshrl.u32 %v2063_v46, %v438_v29  ;;  %vm457_vm6 = vcmp.lt.s32.totalorder %v436_v21, 3 }
 0x115   :  { %vm458_vm7 = vcmp.lt.s32.totalorder %v436_v21, 4  ;;  %v442_v51 = vor.u32 %v441_v42, %v440_v31  ;;  %v445_v53 = vor.u32 %v444_v43, %v443_v33  ;;  %v1791_v55 = vadd.s32 4294967169, %v633_v25 }
 0x116   :  { %v448_v54 = vor.u32 %v447_v44, %v446_v35  ;;  %v451_v58 = vor.u32 %v450_v45, %v449_v37  ;;  %v454_v60 = vor.u32 %v453_v47, %v452_v39  ;;  %vm456_vm8 = vcmp.lt.s32.totalorder %v436_v21, 2 }
 0x117   :  { %v459_v62 = vsel %vm455_vm5, %v439_v41, %v442_v51  ;;  %v463_v1 = vsel %vm455_vm5, %v442_v51, %v445_v53  ;;  %v639_v7 = vadd.s32 1, %v1791_v55  ;;  %v637_v12 = vor.u32 8388608, %v636_v40 }
 0x118   :  { %v460_v63 = vsel %vm458_vm7, %v448_v54, 2102212464  ;;  %v467_v2 = vsel %vm455_vm5, %v445_v53, %v448_v54  ;;  %v464_v5 = vsel %vm458_vm7, %v451_v58, 920167782  ;;  %v468_v6 = vsel %vm458_vm7, %v454_v60, 1326507024 }
 0x119   :  { %v461_v4 = vsel %vm457_vm6, %v445_v53, %v460_v63  ;;  %v465_v8 = vsel %vm457_vm6, %v448_v54, %v464_v5  ;;  %v469_v9 = vsel %vm457_vm6, %v451_v58, %v468_v6  ;;  %v538_v13 = vsel %vm537_vm9, %v536_v27, 0 }
 0x11a   :  { %v462_v14 = vsel %vm456_vm8, %v459_v62, %v461_v4  ;;  %v466_v16 = vsel %vm456_vm8, %v463_v1, %v465_v8  ;;  %v470_v17 = vsel %vm456_vm8, %v467_v2, %v469_v9  ;;  %vm640_vm10 = vcmp.gt.s32.totalorder %v639_v7, 0 }
 0x11b   :  { %v2208_v20 = vmul.u32.u64.low %v2182_v24, %v470_v17  ;;  %v2209_v22 = vmul.u32.u64.high %v2182_v24, %v470_v17, %v2208_v20  ;;  %v2212_v25 = vmul.u32.u64.low %v2182_v24, %v466_v16  ;;  %v2213_v28 = vmul.u32.u64.high %v2182_v24, %v466_v16, %v2212_v25 }
 0x11c   :  { %v641_v29 = vsel %vm640_vm10, %v639_v7, 0  ;;  %v2216_v31 = vand.u32 31, %v538_v13  ;;  %v2218_v33 = vshll.u32 %v637_v12, 8  ;;  %v2220_v35 = vshll.u32 %v534_v26, 8 }
 0x11d   :  { %v643_v27 = vand.u32 31, %v641_v29  ;;  %v2223_v21 = vadd.f32 %v2176_v15, %v292_v23  ;;  %v478_v37 = vmul.u32 %v2182_v24, %v462_v14  ;;  %v642_v39 = vshrl.u32 %v641_v29, 5 }
 0x11e   :  { %v2226_v40 = vshrl.u32 %v538_v13, 5  ;;  %v2229_v41 = vsub.s32 32, %v2216_v31  ;;  %vm480_vm11 = vc.u32 %v2209_v22, %v2212_v25  ;;  %v481_v42 = vadd.s32 1, %v2213_v28 }
 0x11f   :  { %v644_v43 = vsub.s32 32, %v643_v27  ;;  %v543_v26 = vshll.u32 %v2058_v30, %v2216_v31  ;;  %v646_v15 = vshll.u32 %v2058_v30, %v643_v27  ;;  %v649_v23 = vshll.u32 %v2059_v32, %v643_v27 }
 0x120   :  { %v652_v24 = vshll.u32 %v2060_v34, %v643_v27  ;;  %v655_v44 = vshll.u32 %v2061_v36, %v643_v27  ;;  %v482_v45 = vsel %vm480_vm11, %v481_v42, %v2213_v28  ;;  %v658_v60 = vshll.u32 %v2062_v38, %v643_v27 }
 0x121   :  { %v645_v47 = vshrl.u32 %v2058_v30, %v644_v43  ;;  %v647_v51 = vshrl.u32 %v2059_v32, %v644_v43  ;;  %v650_v53 = vshrl.u32 %v2060_v34, %v644_v43  ;;  %v483_v54 = vadd.s32 %v482_v45, %v478_v37 }
 0x122   :  { %v653_v55 = vshrl.u32 %v2061_v36, %v644_v43  ;;  %v656_v58 = vshrl.u32 %v2062_v38, %v644_v43  ;;  %v659_v1 = vshrl.u32 %v2063_v46, %v644_v43  ;;  %vm661_vm12 = vcmp.lt.s32.totalorder %v642_v39, 1 }
 0x123   :  { %v648_v62 = vor.u32 %v647_v51, %v646_v15  ;;  %v651_v63 = vor.u32 %v650_v53, %v649_v23  ;;  %v484_v2 = vadd.s32 536870912, %v483_v54  ;;  %vm662_vm13 = vcmp.lt.s32.totalorder %v642_v39, 2 }
 0x124   :  { %v654_v4 = vor.u32 %v653_v55, %v652_v24  ;;  %v657_v5 = vor.u32 %v656_v58, %v655_v44  ;;  %v660_v6 = vor.u32 %v659_v1, %v658_v60  ;;  %vm663_vm14 = vcmp.lt.s32.totalorder %v642_v39, 3 }
 0x125   :  { %vm664_vm15 = vcmp.lt.s32.totalorder %v642_v39, 4  ;;  %v665_v7 = vsel %vm661_vm12, %v645_v47, %v648_v62  ;;  %v2248_v8 = vshrl.u32 %v484_v2, 30  ;;  %v669_v12 = vsel %vm661_vm12, %v648_v62, %v651_v63 }
 0x126   :  { %v666_v9 = vsel %vm664_vm15, %v654_v4, 2102212464  ;;  %v670_v13 = vsel %vm664_vm15, %v657_v5, 920167782  ;;  %v673_v17 = vsel %vm661_vm12, %v651_v63, %v654_v4  ;;  %v674_v20 = vsel %vm664_vm15, %v660_v6, 1326507024 }
 0x127   :  { %v667_v14 = vsel %vm663_vm14, %v651_v63, %v666_v9  ;;  %v671_v16 = vsel %vm663_vm14, %v654_v4, %v670_v13  ;;  %v486_v28 = vshll.u32 %v2248_v8, 30  ;;  %v675_v27 = vsel %vm663_vm14, %v657_v5, %v674_v20 }
 0x128   :  { %v672_v29 = vsel %vm662_vm13, %v669_v12, %v671_v16  ;;  %v546_v37 = vshll.u32 %v2059_v32, %v2216_v31  ;;  %v676_v42 = vsel %vm662_vm13, %v673_v17, %v675_v27  ;;  %v549_v23 = vshll.u32 %v2060_v34, %v2216_v31 }
 0x129   :  { %v2256_v43 = vmul.u32.u64.low %v2218_v33, %v672_v29  ;;  %v2257_v15 = vmul.u32.u64.high %v2218_v33, %v672_v29, %v2256_v43  ;;  %v2262_v24 = vsub.s32 %v483_v54, %v486_v28  ;;  %v668_v44 = vsel %vm662_vm13, %v665_v7, %v667_v14 }
 0x12a   :  { %v2266_v45 = vmul.u32.u64.low %v2218_v33, %v676_v42  ;;  %v2267_v47 = vmul.u32.u64.high %v2218_v33, %v676_v42, %v2266_v45  ;;  %v544_v51 = vshrl.u32 %v2059_v32, %v2229_v41  ;;  %v547_v53 = vshrl.u32 %v2060_v34, %v2229_v41 }
 0x12b   :  { %v550_v55 = vshrl.u32 %v2061_v36, %v2229_v41  ;;  %v552_v58 = vshll.u32 %v2061_v36, %v2216_v31  ;;  %v489_v54 = vsub.s32 0, %v2262_v24  ;;  %v553_v39 = vshrl.u32 %v2062_v38, %v2229_v41 }
 0x12c   :  { %v555_v60 = vshll.u32 %v2062_v38, %v2216_v31  ;;  %v556_v62 = vshrl.u32 %v2063_v46, %v2229_v41  ;;  %v687_v63 = vadd.s32 1, %v2257_v15  ;;  %v545_v1 = vor.u32 %v544_v51, %v543_v26 }
 0x12d   :  { %v548_v2 = vor.u32 %v547_v53, %v546_v37  ;;  %v551_v4 = vor.u32 %v550_v55, %v549_v23  ;;  %v1784_v5 = vmin.u32 %v489_v54, %v2262_v24  ;;  %v684_v6 = vmul.u32 %v2218_v33, %v668_v44 }
 0x12e   :  { %vm686_vm1 = vc.u32 %v2267_v47, %v2256_v43  ;;  %v554_v7 = vor.u32 %v553_v39, %v552_v58  ;;  %v542_v31 = vshrl.u32 %v2058_v30, %v2229_v41  ;;  %v557_v12 = vor.u32 %v556_v62, %v555_v60 }
 0x12f   :  { %v688_v9 = vsel %vm686_vm1, %v687_v63, %v2257_v15  ;;  %vm558_vm4 = vcmp.lt.s32.totalorder %v2226_v40, 1  ;;  %v491_v13 = vclz %v1784_v5  ;;  %vm561_vm5 = vcmp.lt.s32.totalorder %v2226_v40, 4 }
 0x130   :  { %v689_v26 = vadd.s32 %v688_v9, %v684_v6  ;;  %v735_v14 = vand.u32 2139095040, %v2223_v21  ;;  %vm560_vm6 = vcmp.lt.s32.totalorder %v2226_v40, 3  ;;  %v563_v33 = vsel %vm561_vm5, %v551_v4, 2102212464 }
 0x131   :  { %v566_v16 = vsel %vm558_vm4, %v545_v1, %v548_v2  ;;  %v567_v17 = vsel %vm561_vm5, %v554_v7, 920167782  ;;  %v1785_v20 = vadd.s32 4294967294, %v491_v13  ;;  %vm559_vm7 = vcmp.lt.s32.totalorder %v2226_v40, 2 }
 0x132   :  { %v690_v28 = vadd.s32 536870912, %v689_v26  ;;  %v568_v29 = vsel %vm560_vm6, %v551_v4, %v567_v17  ;;  %v562_v41 = vsel %vm558_vm4, %v542_v31, %v545_v1  ;;  %v570_v37 = vsel %vm558_vm4, %v548_v2, %v551_v4 }
 0x133   :  { %v569_v27 = vsel %vm559_vm7, %v566_v16, %v568_v29  ;;  %v571_v42 = vsel %vm561_vm5, %v557_v12, 1326507024  ;;  %vm1786_vm8 = vcmp.lt.s32.totalorder %v1785_v20, 0  ;;  %v564_v23 = vsel %vm560_vm6, %v548_v2, %v563_v33 }
 0x134   :  { %v2299_v15 = vshrl.u32 %v690_v28, 30  ;;  %v572_v44 = vsel %vm560_vm6, %v554_v7, %v571_v42  ;;  %v494_v45 = vsel %vm1786_vm8, 0, %v1785_v20  ;;  %v479_v60 = vadd.s32 %v2212_v25, %v2209_v22 }
 0x135   :  { %v573_v51 = vsel %vm559_vm7, %v570_v37, %v572_v44  ;;  %v2304_v53 = vmul.u32.u64.low %v2220_v35, %v569_v27  ;;  %v2305_v55 = vmul.u32.u64.high %v2220_v35, %v569_v27, %v2304_v53  ;;  %v495_v58 = vsub.s32 32, %v494_v45 }
 0x136   :  { %v499_v54 = vsub.s32 4294967266, %v494_v45  ;;  %v692_v39 = vshll.u32 %v2299_v15, 30  ;;  %v2312_v62 = vmul.u32.u64.low %v2220_v35, %v573_v51  ;;  %v2313_v63 = vmul.u32.u64.high %v2220_v35, %v573_v51, %v2312_v62 }
 0x137   :  { %v736_v1 = vshrl.u32 %v735_v14, 23  ;;  %v565_v5 = vsel %vm559_vm7, %v562_v41, %v564_v23  ;;  %v497_v6 = vshrl.u32 %v479_v60, %v495_v58  ;;  %v584_v7 = vadd.s32 1, %v2305_v55 }
 0x138   :  { %v500_v2 = vadd.s32 127, %v499_v54  ;;  %v2315_v4 = vsub.s32 %v689_v26, %v692_v39  ;;  %v496_v22 = vshll.u32 %v2262_v24, %v494_v45  ;;  %v581_v25 = vmul.u32 %v2220_v35, %v565_v5 }
 0x139   :  { %v1795_v9 = vadd.s32 4294967169, %v736_v1  ;;  %vm583_vm9 = vc.u32 %v2313_v63, %v2304_v53  ;;  %v732_v17 = vand.u32 2147483647, %v2223_v21  ;;  %vm2351_vm12 = vcmp.le.f32.partialorder %v423_v59, 0.7853982 }
 0x13a   :  { %v501_v31 = vshll.u32 %v500_v2, 23  ;;  %v695_v12 = vsub.s32 0, %v2315_v4  ;;  %v585_v40 = vsel %vm583_vm9, %v584_v7, %v2305_v55  ;;  %v498_v33 = vor.u32 %v497_v6, %v496_v22 }
 0x13b   :  { %v742_v13 = vadd.s32 1, %v1795_v9  ;;  %v586_v16 = vadd.s32 %v585_v40, %v581_v25  ;;  %v739_v37 = vand.u32 8388607, %v732_v17  ;;  %vm425_vm13 = vcmp.lt.s32.totalorder %v2152_v56, 0 }
 0x13c   :  { %v502_v26 = vor.u32 4788187, %v501_v31  ;;  %v1792_v14 = vmin.u32 %v695_v12, %v2315_v4  ;;  %v505_v35 = vcvt.s32.f32 %v498_v33  ;;  %v509_v59 = vsub.s32 4, %v2248_v8 }
 0x13d   :  { %vm743_vm10 = vcmp.gt.s32.totalorder %v742_v13, 0  ;;  %v587_v29 = vadd.s32 536870912, %v586_v16  ;;  %v740_v55 = vor.u32 8388608, %v739_v37  ;;  %vm2418_vm7 = vcmp.lt.s32.totalorder %v259_v48, 500 }
 0x13e   :  { %v744_v20 = vsel %vm743_vm10, %v742_v13, 0  ;;  %v503_v28 = vand.u32 2147483647, %v502_v26  ;;  %v697_v41 = vclz %v1792_v14  ;;  %vm528_vm8 = vcmp.lt.s32.totalorder %v2159_v61, 0 }
 0x13f   :  { %v746_v24 = vand.u32 31, %v744_v20  ;;  %v2328_v27 = vshrl.u32 %v587_v29, 30  ;;  %v2335_v58 = vshrl.u32 %v744_v20, 5  ;;  %vm2435_vm9 = vcmp.le.f32.partialorder %v526_v3, 0.7853982 }
 0x140   :  { %v506_v23 = vmul.f32 %v505_v35, %v503_v28  ;;  %v1793_v45 = vadd.s32 4294967294, %v697_v41  ;;  %v2358_v28 = vshll.u32 %v740_v55, 8  ;;  %v582_v55 = vadd.s32 %v2304_v53, %v2313_v63 }
 0x141   :  { %v747_v42 = vsub.s32 32, %v746_v24  ;;  %v589_v44 = vshll.u32 %v2328_v27, 30  ;;  %v749_v54 = vshll.u32 %v2058_v30, %v746_v24  ;;  %v752_v60 = vshll.u32 %v2059_v32, %v746_v24 }
 0x142   :  { %v507_v1 = vxor.u32 2147483648, %v506_v23  ;;  %v755_v5 = vshll.u32 %v2060_v34, %v746_v24  ;;  %vm1794_vm11 = vcmp.lt.s32.totalorder %v1793_v45, 0  ;;  %v758_v9 = vshll.u32 %v2061_v36, %v746_v24 }
 0x143   :  { %v2333_v51 = vsub.s32 %v586_v16, %v589_v44  ;;  %v750_v39 = vshrl.u32 %v2059_v32, %v747_v42  ;;  %v753_v62 = vshrl.u32 %v2060_v34, %v747_v42  ;;  %v756_v6 = vshrl.u32 %v2061_v36, %v747_v42 }
 0x144   :  { %v759_v31 = vshrl.u32 %v2062_v38, %v747_v42  ;;  %v761_v25 = vshll.u32 %v2062_v38, %v746_v24  ;;  %v762_v13 = vshrl.u32 %v2063_v46, %v747_v42  ;;  %v2356_v33 = vsel %vm1794_vm11, 0, %v1793_v45 }
 0x145   :  { %v592_v2 = vsub.s32 0, %v2333_v51  ;;  %v754_v7 = vor.u32 %v753_v62, %v752_v60  ;;  %v757_v22 = vor.u32 %v756_v6, %v755_v5  ;;  %v751_v14 = vor.u32 %v750_v39, %v749_v54 }
 0x146   :  { %v760_v40 = vor.u32 %v759_v31, %v758_v9  ;;  %v763_v20 = vor.u32 %v762_v13, %v761_v25  ;;  %v508_v29 = vsel %vm425_vm13, %v507_v1, %v506_v23  ;;  %vm764_vm14 = vcmp.lt.s32.totalorder %v2335_v58, 1 }
 0x147   :  { %v1788_v12 = vmin.u32 %v592_v2, %v2333_v51  ;;  %vm767_vm15 = vcmp.lt.s32.totalorder %v2335_v58, 4  ;;  %vm766_vm1 = vcmp.lt.s32.totalorder %v2335_v58, 3  ;;  %v776_v35 = vsel %vm764_vm14, %v754_v7, %v757_v22 }
 0x148   :  { %v773_v41 = vsel %vm767_vm15, %v760_v40, 920167782  ;;  %v705_v37 = vsub.s32 4294967266, %v2356_v33  ;;  %v772_v23 = vsel %vm764_vm14, %v751_v14, %v754_v7  ;;  %v777_v45 = vsel %vm767_vm15, %v763_v20, 1326507024 }
 0x149   :  { %v594_v16 = vclz %v1788_v12  ;;  %v774_v44 = vsel %vm766_vm1, %v757_v22, %v773_v41  ;;  %vm765_vm5 = vcmp.lt.s32.totalorder %v2335_v58, 2  ;;  %v778_v54 = vsel %vm766_vm1, %v760_v40, %v777_v45  ;;  %v179_v45 = vld [vmem:[#allocation12 + $0x40] sm:$0xff] }
 0x14a   :  { %v748_v60 = vshrl.u32 %v2058_v30, %v747_v42  ;;  %v769_v62 = vsel %vm767_vm15, %v757_v22, 2102212464  ;;  %v779_v1 = vsel %vm765_vm5, %v776_v35, %v778_v54  ;;  %v511_v2 = vsel %vm2351_vm12, %v2152_v56, %v508_v29 }
 0x14b   :  { %v1789_v24 = vadd.s32 4294967294, %v594_v16  ;;  %v775_v5 = vsel %vm765_vm5, %v772_v23, %v774_v44  ;;  %v706_v6 = vadd.s32 127, %v705_v37  ;;  %v770_v13 = vsel %vm766_vm1, %v754_v7, %v769_v62 }
 0x14c   :  { %v768_v9 = vsel %vm764_vm14, %v748_v60, %v751_v14  ;;  %v2395_v42 = vmul.u32.u64.low %v2358_v28, %v779_v1  ;;  %v2396_v31 = vmul.u32.u64.high %v2358_v28, %v779_v1, %v2395_v42  ;;  %1913 = vcosq.f32 %v511_v2  ;;  %v183_v1 = vld [vmem:[#allocation12 + $0x60] sm:$0xff] }
 0x14d   :  { %vm1790_vm4 = vcmp.lt.s32.totalorder %v1789_v24, 0  ;;  %v701_v40 = vsub.s32 32, %v2356_v33  ;;  %v2403_v16 = vmul.u32.u64.low %v2358_v28, %v775_v5  ;;  %v2404_v20 = vmul.u32.u64.high %v2358_v28, %v775_v5, %v2403_v16 }
 0x14e   :  { %v597_v39 = vsel %vm1790_vm4, 0, %v1789_v24  ;;  %1915 = vsinq.f32 %v511_v2  ;;  %v685_v24 = vadd.s32 %v2256_v43, %v2267_v47  ;;  %v771_v41 = vsel %vm765_vm5, %v768_v9, %v770_v13  ;;  %v184_v2 = vld [vmem:[#allocation12 + $0x68] sm:$0xff]  ;;  %v182_v9 = vld [vmem:[#allocation12 + $0x58] sm:$0xff] }
 0x14f   :  { %v598_v53 = vsub.s32 32, %v597_v39  ;;  %v602_v63 = vsub.s32 4294967266, %v597_v39  ;;  %v599_v12 = vshll.u32 %v2333_v51, %v597_v39  ;;  %v707_v51 = vshll.u32 %v706_v6, 23  ;;  %v181_v6 = vld [vmem:[#allocation12 + $0x50] sm:$0xff] }
 0x150   :  { %vm789_vm6 = vc.u32 %v2396_v31, %v2403_v16  ;;  %v703_v7 = vshrl.u32 %v685_v24, %v701_v40  ;;  %v790_v37 = vadd.s32 1, %v2404_v20  ;;  %v510_v23 = vsel %vm425_vm13, %v509_v59, %v2248_v8  ;;  %v180_v8 = vld [vmem:[#allocation12 + $0x48] sm:$0xff] }
 0x151   :  { %v600_v22 = vshrl.u32 %v582_v55, %v598_v53  ;;  %v603_v25 = vadd.s32 127, %v602_v63  ;;  %v787_v58 = vmul.u32 %v2358_v28, %v771_v41  ;;  %v708_v55 = vor.u32 4788187, %v707_v51 }
 0x152   :  { %v791_v54 = vsel %vm789_vm6, %v790_v37, %v2404_v20  ;;  %v2064_v39 = vmov 0.0   ;;  %v702_v59 = vshll.u32 %v2315_v4, %v2356_v33  ;;  %v612_v53 = vsub.s32 4, %v2328_v27 }
 0x153   :  { %v601_v14 = vor.u32 %v600_v22, %v599_v12  ;;  %v604_v29 = vshll.u32 %v603_v25, 23  ;;  %263 = vst.msk [vmem:[#allocation4] sm:$0xf] %vm2418_vm7, %v2064_v39  ;;  %264 = vst.msk [vmem:[#allocation5] sm:$0xf] %vm2418_vm7, %v2064_v39  ;;  %v792_v62 = vadd.s32 %v791_v54, %v787_v58  ;;  %v512_v63 = vsel %vm2351_vm12, 0, %v510_v23 }
 0x154   :  { %v2442_v5 = vmul.f32 1.4142135, %v179_v45  ;;  %v704_v4 = vor.u32 %v703_v7, %v702_v59  ;;  %v2444_v3 = vmul.f32 1.4142135, %v180_v8  ;;  %v185_v12 = vld [vmem:[#allocation12 + $0x70] sm:$0xff]  ;;  %v186_v22 = vld [vmem:[#allocation12 + $0x78] sm:$0xff]  ;;  %vm515_vm4 = vweird.f32 %v2152_v56 }
 0x155   :  { %v605_v35 = vor.u32 4788187, %v604_v29  ;;  %v608_v47 = vcvt.s32.f32 %v601_v14  ;;  %v793_v42 = vadd.s32 536870912, %v792_v62  ;;  %v709_v25 = vand.u32 2147483647, %v708_v55  ;;  %v171_v23 = vld [vmem:[#allocation12] sm:$0xff] }
 0x156   :  { %v2446_v13 = vmul.f32 1.4142135, %v183_v1  ;;  %v2448_v40 = vmul.f32 1.4142135, %v184_v2  ;;  %v197_v14 = vmul.f32 1.4142135, %v181_v6  ;;  %vm618_vm6 = vweird.f32 %v2159_v61 }
 0x157   :  { %v606_v43 = vand.u32 2147483647, %v605_v35  ;;  %v2452_v20 = vshrl.u32 %v793_v42, 30  ;;  %v198_v24 = vmul.f32 1.4142135, %v182_v9  ;;  %v711_v35 = vcvt.s32.f32 %v704_v4  ;;  %v175_v54 = vld [vmem:[#allocation12 + $0x20] sm:$0xff] }
 0x158   :  { %v201_v51 = vmul.f32 1.4142135, %v185_v12  ;;  %v202_v37 = vmul.f32 1.4142135, %v186_v22  ;;  %v176_v8 = vld [vmem:[#allocation12 + $0x28] sm:$0xff]  ;;  %v173_v59 = vld [vmem:[#allocation12 + $0x10] sm:$0xff] }
 0x159   :  { %v609_v60 = vmul.f32 %v608_v47, %v606_v43  ;;  %v1914_v41 = vpop.eup %1913  ;;  %v795_v7 = vshll.u32 %v2452_v20, 30  ;;  %v172_v47 = vld [vmem:[#allocation12 + $0x8] sm:$0xff]  ;;  %v712_v58 = vmul.f32 %v711_v35, %v709_v25  ;;  %v1846_v55 = vpack.c.bf16 %v198_v24, %v197_v14  ;;  %v174_v9 = vld [vmem:[#allocation12 + $0x18] sm:$0xff]  ;;  %v177_v4 = vld [vmem:[#allocation12 + $0x30] sm:$0xff] }
 0x15a   :  { %v516_v1 = vand.u32 3, %v512_v63  ;;  %v1848_v2 = vpack.c.bf16 %v202_v37, %v201_v51  ;;  %v2463_v6 = vmul.f32 1.4142135, %v171_v23  ;;  %v522_v12 = vxor.u32 2147483648, %v1914_v41  ;;  %v178_v22 = vld [vmem:[#allocation12 + $0x38] sm:$0xff] }
 0x15b   :  { %v610_v33 = vxor.u32 2147483648, %v609_v60  ;;  %v1916_v43 = vpop.eup %1915  ;;  %v2458_v45 = vsub.s32 %v792_v62, %v795_v7  ;;  %256 = vst.msk [vmem:[#allocation3 + $0x28] sm:$0xff] %vm2118_vm2, %v1846_v55  ;;  %v2468_v62 = vmul.f32 1.4142135, %v172_v47  ;;  %v189_v63 = vmul.f32 1.4142135, %v173_v59 }
 0x15c   :  { %v519_v42 = vxor.u32 2147483648, %v1916_v43  ;;  %258 = vst.msk [vmem:[#allocation3 + $0x38] sm:$0xff] %vm2118_vm2, %v1848_v2  ;;  %vm631_vm10 = vcmp.lt.s32.totalorder %v2167_v10, 0  ;;  %v713_v25 = vxor.u32 2147483648, %v712_v58  ;;  %vm518_vm11 = vcmp.eq.s32.totalorder %v516_v1, 0 }
 0x15d   :  { %v611_v26 = vsel %vm528_vm8, %v610_v33, %v609_v60  ;;  %v613_v60 = vsel %vm528_vm8, %v612_v53, %v2328_v27  ;;  %v798_v33 = vsub.s32 0, %v2458_v45  ;;  %v2472_v27 = vmul.f32 1.4142135, %v175_v54 }
 0x15e   :  { %v614_v29 = vsel %vm2435_vm9, %v2159_v61, %v611_v26  ;;  %v2474_v53 = vmul.f32 1.4142135, %v176_v8  ;;  %v615_v14 = vsel %vm2435_vm9, 0, %v613_v60  ;;  %vm521_vm12 = vcmp.eq.s32.totalorder %v516_v1, 2 }
 0x15f   :  { %1917 = vcosq.f32 %v614_v29  ;;  %v1796_v26 = vmin.u32 %v798_v33, %v2458_v45  ;;  %v193_v51 = vmul.f32 1.4142135, %v177_v4  ;;  %v194_v35 = vmul.f32 1.4142135, %v178_v22 }
 0x160   :  { %1919 = vsinq.f32 %v614_v29  ;;  %v190_v29 = vmul.f32 1.4142135, %v174_v9  ;;  %v619_v7 = vand.u32 3, %v615_v14  ;;  %v520_v37 = vsel %vm518_vm11, %v1914_v41, %v519_v42 }
 0x161   :  { %v800_v24 = vclz %v1796_v26  ;;  %v523_v23 = vsel %vm521_vm12, %v522_v12, %v1916_v43  ;;  %v714_v55 = vsel %vm631_vm10, %v713_v25, %v712_v58  ;;  %v1844_v8 = vpack.c.bf16 %v194_v35, %v193_v51 }
 0x162   :  { %v1842_v47 = vpack.c.bf16 %v190_v29, %v189_v63  ;;  %vm517_vm13 = vcmp.lt.s32.totalorder %v516_v1, 2  ;;  %v837_v59 = vand.u32 127, %v259_v48  ;;  %vm2487_vm14 = vcmp.le.f32.partialorder %v629_v19, 0.7853982 }
 0x163   :  { %v1797_v54 = vadd.s32 4294967294, %v800_v24  ;;  %v524_v41 = vsel %vm517_vm13, %v520_v37, %v523_v23  ;;  %254 = vst.msk [vmem:[#allocation3 + $0x18] sm:$0xff] %vm2118_vm2, %v1844_v8  ;;  %v717_v58 = vsel %vm2487_vm14, %v2167_v10, %v714_v55  ;;  %vm621_vm1 = vcmp.eq.s32.totalorder %v619_v7, 0 }
 0x164   :  { %252 = vst.msk [vmem:[#allocation3 + $0x8] sm:$0xff] %vm2118_vm2, %v1842_v47  ;;  %v788_v19 = vadd.s32 %v2403_v16, %v2396_v31  ;;  %vm624_vm5 = vcmp.eq.s32.totalorder %v619_v7, 2  ;;  %v525_v18 = vsel %vm515_vm4, nan, %v524_v41  ;;  %vm840_vm2 = vcmp.lt.s32.totalorder %v837_v59, 8 }
 0x165   :  { %vm1798_vm15 = vcmp.lt.s32.totalorder %v1797_v54, 0  ;;  %1921 = vcosq.f32 %v717_v58  ;;  %vm620_vm8 = vcmp.lt.s32.totalorder %v619_v7, 2  ;;  %v844_v25 = vpack.c.bf16 %v525_v18, %v525_v18 }
 0x166   :  { %v803_v48 = vsel %vm1798_vm15, 0, %v1797_v54  ;;  %1923 = vsinq.f32 %v717_v58  ;;  %v841_v14 = vsel %vm840_vm2, 1.0, %v2064_v39  ;;  %vm848_vm9 = vcmask 64512  }
 0x167   :  { %v804_v1 = vsub.s32 32, %v803_v48  ;;  %v808_v2 = vsub.s32 4294967266, %v803_v48  ;;  %v805_v33 = vshll.u32 %v2458_v45, %v803_v48  ;;  %v1951_v45 = vpack.c.bf16 %v2448_v40, %v2444_v3 }
 0x168   :  { %v854_v61 = vsel %vm161_vm0, %v844_v25, 0  ;;  %v2507_v7 = vpack.c.bf16 %v841_v14, %v841_v14  ;;  %v1952_v37 = vpack.c.bf16 %v2446_v13, %v2442_v5  ;;  %v715_v39 = vsub.s32 4, %v2299_v15  ;;  %v982_v5 = vld [vmem:[#allocation9] sm:$0xff]  ;;  %v2560_v14 = vld [vmem:[%s2911_s5] sm:$0xf] }
 0x169   :  { %v806_v42 = vshrl.u32 %v788_v19, %v804_v1  ;;  %v809_v12 = vadd.s32 127, %v808_v2  ;;  %v1953_v3 = vpack.c.bf16 %v2474_v53, %v2468_v62  ;;  %vm734_vm11 = vcmp.lt.s32.totalorder %v2223_v21, 0 }
 0x16a   :  { %v1954_v47 = vpack.c.bf16 %v2472_v27, %v2463_v6  ;;  %vm2522_vm12 = vcmp.le.f32.partialorder %v732_v17, 0.7853982  ;;  %v716_v53 = vsel %vm631_vm10, %v715_v39, %v2299_v15  ;;  %v983_v55 = vpack.c.bf16 %v982_v5, %v982_v5 }
 0x16b   :  { %v807_v63 = vor.u32 %v806_v42, %v805_v33  ;;  %v810_v31 = vshll.u32 %v809_v12, 23  ;;  %v818_v17 = vsub.s32 4, %v2452_v20  ;;  %v718_v54 = vsel %vm2487_vm14, 0, %v716_v53  ;;  %v1910_v25 = vld [vmem:[#allocation3 + $0x8] ss:$16 sps:$4 sm:$0xff]  }
 0x16c   :  { %v1918_v43 = vpop.eup %1917  ;;  %v722_v59 = vand.u32 3, %v718_v54  ;;  %vm721_vm15 = vweird.f32 %v2167_v10  ;;  %vm824_vm2 = vweird.f32 %v2223_v21  ;;  %v1907_v10 = vld [vmem:[#allocation3 + $0x28] ss:$16 sps:$4 sm:$0xff]  }
 0x16d   :  { %v1920_v60 = vpop.eup %1919  ;;  %v625_v9 = vxor.u32 2147483648, %v1918_v43  ;;  %v811_v29 = vor.u32 4788187, %v810_v31  ;;  %v814_v35 = vcvt.s32.f32 %v807_v63  ;;  %v819_v15 = vsel %vm734_vm11, %v818_v17, %v2452_v20  ;;  %v1909_v63 = vld [vmem:[#allocation3 + $0x2c] ss:$16 sps:$4 sm:$0xff]  }
 0x16e   :  { %v622_v4 = vxor.u32 2147483648, %v1920_v60  ;;  %v821_v58 = vsel %vm2522_vm12, 0, %v819_v15  ;;  %vm724_vm10 = vcmp.eq.s32.totalorder %v722_v59, 0  ;;  %vm727_vm13 = vcmp.eq.s32.totalorder %v722_v59, 2 }
 0x16f   :  { %v626_v22 = vsel %vm624_vm5, %v625_v9, %v1920_v60  ;;  %v812_v51 = vand.u32 2147483647, %v811_v29  ;;  %v825_v60 = vand.u32 3, %v821_v58  ;;  %vm723_vm14 = vcmp.lt.s32.totalorder %v722_v59, 2 }
 0x170   :  { %v623_v56 = vsel %vm621_vm1, %v1918_v43, %v622_v4 }
 0x171   :  { %v627_v16 = vsel %vm620_vm8, %v623_v56, %v626_v22  ;;  %v815_v23 = vmul.f32 %v814_v35, %v812_v51  ;;  %vm830_vm1 = vcmp.eq.s32.totalorder %v825_v60, 2  ;;  %vm827_vm4 = vcmp.eq.s32.totalorder %v825_v60, 0 }
 0x172   :  { %v628_v26 = vsel %vm618_vm6, nan, %v627_v16  ;;  %v1922_v27 = vpop.eup %1921  ;;  %vm826_vm5 = vcmp.lt.s32.totalorder %v825_v60, 2  ;;  %v1912_v16 = vld [vmem:[#allocation3 + $0xc] ss:$16 sps:$4 sm:$0xff]   ;;  %v1001_v51 = vrot.slane %v2560_v14, %v2146_v52  ;;  %v1005_v60 = vrot.slane %v2560_v14, %v2155_v57 }
 0x173   :  { %v845_v24 = vpack.c.bf16 %v628_v26, %v628_v26  ;;  %v816_v40 = vxor.u32 2147483648, %v815_v23  ;;  %v1924_v8 = vpop.eup %1923  ;;  %v728_v43 = vxor.u32 2147483648, %v1922_v27 }
 0x174   :  { %v725_v41 = vxor.u32 2147483648, %v1924_v8 }
 0x175   :  { %1799 = vmatprep.subr.msk.bf16.mxu0 %vm161_vm0, %v845_v24  ;;  %v817_v62 = vsel %vm734_vm11, %v816_v40, %v815_v23  ;;  %v729_v48 = vsel %vm727_vm13, %v728_v43, %v1924_v8  ;;  %v997_v24 = vrot.slane %v2560_v14, %v2138_v50 }
 0x176   :  { %880 = vmatpush1.bf16.msra.mxu0 %v854_v61  ;;  %v820_v6 = vsel %vm2522_vm12, %v2223_v21, %v817_v62  ;;  %v726_v28 = vsel %vm724_vm10, %v1922_v27, %v725_v41 }
 0x177   :  { %1069 = vmatprep.subr.bf16.mxu0 %v1951_v45  ;;  %1925 = vcosq.f32 %v820_v6  ;;  %v730_v19 = vsel %vm723_vm14, %v726_v28, %v729_v48 }
 0x178   :  { %1927 = vsinq.f32 %v820_v6  ;;  %v731_v4 = vsel %vm721_vm15, nan, %v730_v19  ;;  %v1009_v19 = vrot.slane %v2560_v14, %v2170_v11 }
 0x179   :  { %1800 = vmatmul.mubr.msk.bf16.vlgmr.msra.gmra.mxu0 %vm848_vm9, %v2507_v7  ;;  %v846_v12 = vpack.c.bf16 %v731_v4, %v731_v4 }
 0x17a   :  { %1070 = vmatpush1.bf16.msra.mxu0 %v1952_v37  ;;  %1089 = vmatprep.mubr.bf16.mxu0 %v2057_v0 }
 0x17b   :  { %1071 = vmatprep.subr.bf16.mxu0 %v1953_v3  ;;  %v860_v31 = vsel %vm161_vm0, %v846_v12, 0  ;;  %v2065_v3 = vmov 1966171168  }
 0x17c   :  { %v954_v40 = vunpack.c.l.s4 %v2065_v3 }
 0x17e   :  { %1072 = vmatpush1.bf16.msra.mxu0 %v1954_v47  ;;  %v955_v27 = vunpack.c.0.s8 %v954_v40 }
 0x180   :  { %v2577_v41 = vsub.s32 %v955_v27, %v2135_v49 }
 0x181   :  { %1811 = vmatmul.mubr.msk.bf16.vlgmr.msra.gmra.mxu0 %vm337_vm3, %v983_v55 }
 0x182   :  { %1600 = vmatprep.mubr.bf16.mxu0 %v2057_v0 }
 0x184   :  { %v1926_v1 = vpop.eup %1925 }
 0x185   :  { %v1928_v2 = vpop.eup %1927  ;;  %v831_v9 = vxor.u32 2147483648, %v1926_v1 }
 0x186   :  { %v828_v20 = vxor.u32 2147483648, %v1928_v2 }
 0x187   :  { %v832_v18 = vsel %vm830_vm1, %v831_v9, %v1928_v2 }
 0x188   :  { %v829_v33 = vsel %vm827_vm4, %v1926_v1, %v828_v20 }
 0x189   :  { %v833_v42 = vsel %vm826_vm5, %v829_v33, %v832_v18 }
 0x18a   :  { %v834_v22 = vsel %vm824_vm2, nan, %v833_v42 }
 0x18b   :  { %v847_v56 = vpack.c.bf16 %v834_v22, %v834_v22 }
 0x18d   :  { %1801 = vmatprep.subr.msk.bf16.mxu1 %vm161_vm0, %v847_v56 }
 0x18e   :  { %921 = vmatpush1.bf16.msra.mxu1 %v860_v31 }
 0x18f   :  { %1110 = vmatprep.subr.bf16.mxu1 %v1909_v63 }
 0x191   :  { %1802 = vmatmul.mubr.msk.bf16.vlgmr.msra.gmra.mxu1 %vm848_vm9, %v2507_v7 }
 0x192   :  { %1111 = vmatpush1.bf16.msra.mxu1 %v1907_v10  ;;  %1130 = vmatprep.mubr.bf16.mxu1 %v2057_v0 }
 0x193   :  { %1112 = vmatprep.subr.bf16.mxu1 %v1912_v16 }
 0x196   :  { %1113 = vmatpush1.bf16.msra.mxu1 %v1910_v25 }
 0x199   :  { %1812 = vmatmul.mubr.msk.bf16.vlgmr.msra.gmra.mxu1 %vm337_vm3, %v983_v55 }
 0x19a   :  { %1641 = vmatprep.mubr.bf16.mxu1 %v2057_v0 }
 0x239   :  { %v2553_v21 = vpop.f32.mrf.mxu0 }
 0x23b   :  { %v2555_v26 = vpop.f32.mrf.mxu0 }
 0x23c   :  { %v951_v28 = vcombine.low %v2553_v21, %v2555_v26 }
 0x23d   :  { %v903_v29 = vpop.f32.mrf.mxu0 }
 0x23f   :  { %v904_v45 = vpop.f32.mrf.mxu0 }
 0x241   :  { %v1091_v35 = vpop.f32.mrf.mxu0 }
 0x242   :  { %v2566_v61 = vadd.f32 %v1091_v35, %v997_v24 }
 0x243   :  { %v1093_v0 = vpop.f32.mrf.mxu0 }
 0x244   :  { %v1142_v37 = vand.u32 2139095040, %v2566_v61  ;;  %v2569_v23 = vadd.f32 %v1093_v0, %v1001_v51  ;;  %v1139_v5 = vand.u32 2147483647, %v2566_v61  ;;  %v959_v0 = vrot.slane %v951_v28, %v2577_v41 }
 0x245   :  { %v1095_v39 = vpop.f32.mrf.mxu0 }
 0x246   :  { %v1143_v47 = vshrl.u32 %v1142_v37, 23  ;;  %v1245_v13 = vand.u32 2139095040, %v2569_v23  ;;  %v1146_v17 = vand.u32 8388607, %v1139_v5  ;;  %v1242_v59 = vand.u32 2147483647, %v2569_v23 }
 0x247   :  { %v1096_v62 = vpop.f32.mrf.mxu0 }
 0x248   :  { %v1813_v53 = vadd.s32 4294967169, %v1143_v47  ;;  %v1246_v6 = vshrl.u32 %v1245_v13, 23  ;;  %v1147_v48 = vor.u32 8388608, %v1146_v17  ;;  %v2592_v18 = vand.u32 8388607, %v1242_v59 }
 0x24a   :  { %v1149_v55 = vadd.s32 1, %v1813_v53  ;;  %v1817_v54 = vadd.s32 4294967169, %v1246_v6  ;;  %v1187_v62 = vshll.u32 %v1147_v48, 8 }
 0x24c   :  { %vm1150_vm3 = vcmp.gt.s32.totalorder %v1149_v55, 0  ;;  %v1252_v15 = vadd.s32 1, %v1817_v54 }
 0x24d   :  { %v1151_v8 = vsel %vm1150_vm3, %v1149_v55, 0 }
 0x24e   :  { %v1152_v43 = vshrl.u32 %v1151_v8, 5  ;;  %v1153_v58 = vand.u32 31, %v1151_v8  ;;  %vm1253_vm6 = vcmp.gt.s32.totalorder %v1252_v15, 0 }
 0x24f   :  { %v1254_v25 = vsel %vm1253_vm6, %v1252_v15, 0 }
 0x250   :  { %v1154_v1 = vsub.s32 32, %v1153_v58  ;;  %v1156_v2 = vshll.u32 %v2058_v30, %v1153_v58  ;;  %v1159_v9 = vshll.u32 %v2059_v32, %v1153_v58  ;;  %v1162_v49 = vshll.u32 %v2060_v34, %v1153_v58 }
 0x251   :  { %v1165_v20 = vshll.u32 %v2061_v36, %v1153_v58  ;;  %v1168_v4 = vshll.u32 %v2062_v38, %v1153_v58  ;;  %vm1171_vm8 = vcmp.lt.s32.totalorder %v1152_v43, 1  ;;  %vm1174_vm11 = vcmp.lt.s32.totalorder %v1152_v43, 4  ;;  %v940_v35 = vpop.f32.mrf.mxu1 }
 0x252   :  { %v1157_v33 = vshrl.u32 %v2059_v32, %v1154_v1  ;;  %v1160_v42 = vshrl.u32 %v2060_v34, %v1154_v1  ;;  %v1163_v12 = vshrl.u32 %v2061_v36, %v1154_v1  ;;  %v1155_v22 = vshrl.u32 %v2058_v30, %v1154_v1 }
 0x253   :  { %v1166_v56 = vshrl.u32 %v2062_v38, %v1154_v1  ;;  %v1169_v63 = vshrl.u32 %v2063_v46, %v1154_v1  ;;  %vm1173_vm12 = vcmp.lt.s32.totalorder %v1152_v43, 3  ;;  %v1256_v29 = vand.u32 31, %v1254_v25  ;;  %v942_v53 = vpop.f32.mrf.mxu1 }
 0x254   :  { %v1158_v31 = vor.u32 %v1157_v33, %v1156_v2  ;;  %v1161_v10 = vor.u32 %v1160_v42, %v1159_v9  ;;  %v1164_v16 = vor.u32 %v1163_v12, %v1162_v49  ;;  %vm1172_vm10 = vcmp.lt.s32.totalorder %v1152_v43, 2 }
 0x255   :  { %v1167_v21 = vor.u32 %v1166_v56, %v1165_v20  ;;  %v1170_v26 = vor.u32 %v1169_v63, %v1168_v4  ;;  %v1257_v3 = vsub.s32 32, %v1256_v29  ;;  %v1259_v17 = vshll.u32 %v2058_v30, %v1256_v29  ;;  %v944_v28 = vpop.f32.mrf.mxu1 }
 0x256   :  { %v1176_v24 = vsel %vm1174_vm11, %v1164_v16, 2102212464  ;;  %v1179_v45 = vsel %vm1171_vm8, %v1158_v31, %v1161_v10  ;;  %v1183_v51 = vsel %vm1171_vm8, %v1161_v10, %v1164_v16  ;;  %v1175_v40 = vsel %vm1171_vm8, %v1155_v22, %v1158_v31 }
 0x257   :  { %v1180_v37 = vsel %vm1174_vm11, %v1167_v21, 920167782  ;;  %v1184_v39 = vsel %vm1174_vm11, %v1170_v26, 1326507024  ;;  %v1177_v6 = vsel %vm1173_vm12, %v1161_v10, %v1176_v24  ;;  %v952_v54 = vcombine.low %v940_v35, %v942_v53  ;;  %v945_v42 = vpop.f32.mrf.mxu1 }
 0x258   :  { %v1181_v47 = vsel %vm1173_vm12, %v1164_v16, %v1180_v37  ;;  %v1185_v13 = vsel %vm1173_vm12, %v1167_v21, %v1184_v39  ;;  %v1260_v58 = vshrl.u32 %v2059_v32, %v1257_v3  ;;  %v1262_v48 = vshll.u32 %v2059_v32, %v1256_v29  ;;  %v843_v16 = vld [vmem:[#allocation4] sm:$0xf] }
 0x259   :  { %v1182_v27 = vsel %vm1172_vm10, %v1179_v45, %v1181_v47  ;;  %v1186_v55 = vsel %vm1172_vm10, %v1183_v51, %v1185_v13  ;;  %v1263_v9 = vshrl.u32 %v2060_v34, %v1257_v3  ;;  %v966_v49 = vrot.slane %v952_v54, %v2577_v41 }
 0x25a   :  { %v2613_v8 = vmul.u32.u64.low %v1187_v62, %v1186_v55  ;;  %v2614_v15 = vmul.u32.u64.high %v1187_v62, %v1186_v55, %v2613_v8  ;;  %v2617_v1 = vmul.u32.u64.low %v1187_v62, %v1182_v27  ;;  %v2618_v2 = vmul.u32.u64.high %v1187_v62, %v1182_v27, %v2617_v1 }
 0x25b   :  { %v1178_v20 = vsel %vm1172_vm10, %v1175_v40, %v1177_v6  ;;  %v1250_v4 = vor.u32 8388608, %v2592_v18  ;;  %v2626_v33 = vshrl.u32 %v1254_v25, 5  ;;  %v1265_v12 = vshll.u32 %v2060_v34, %v1256_v29  ;;  %v1132_v25 = vpop.f32.mrf.mxu1 }
 0x25c   :  { %v1266_v22 = vshrl.u32 %v2061_v36, %v1257_v3  ;;  %v1268_v56 = vshll.u32 %v2061_v36, %v1256_v29  ;;  %v1269_v63 = vshrl.u32 %v2062_v38, %v1257_v3  ;;  %v967_v31 = vcombine.low %v959_v0, %v966_v49 }
 0x25d   :  { %vm1196_vm13 = vc.u32 %v2614_v15, %v2617_v1  ;;  %v1261_v10 = vor.u32 %v1260_v58, %v1259_v17  ;;  %v1271_v43 = vshll.u32 %v2062_v38, %v1256_v29  ;;  %v1197_v18 = vadd.s32 1, %v2618_v2  ;;  %v1134_v39 = vpop.f32.mrf.mxu1 }
 0x25e   :  { %v1264_v21 = vor.u32 %v1263_v9, %v1262_v48  ;;  %v1270_v26 = vor.u32 %v1269_v63, %v1268_v56  ;;  %v1272_v24 = vshrl.u32 %v2063_v46, %v1257_v3  ;;  %v974_v45 = vrot.slane %v967_v31, %v2577_v41 }
 0x25f   :  { %v1194_v51 = vmul.u32 %v1187_v62, %v1178_v20  ;;  %v2641_v35 = vadd.f32 %v1132_v25, %v1005_v60  ;;  %vm1274_vm14 = vcmp.lt.s32.totalorder %v2626_v33, 1  ;;  %v1198_v29 = vsel %vm1196_vm13, %v1197_v18, %v2618_v2 }
 0x260   :  { %v1258_v0 = vshrl.u32 %v2058_v30, %v1257_v3  ;;  %v1267_v37 = vor.u32 %v1266_v22, %v1265_v12  ;;  %vm1277_vm15 = vcmp.lt.s32.totalorder %v2626_v33, 4  ;;  %v976_v40 = vadd.f32 %v974_v45, %v843_v16  ;;  %v1136_v3 = vpop.f32.mrf.mxu1 }
 0x261   :  { %v1199_v47 = vadd.s32 %v1198_v29, %v1194_v51  ;;  %v1345_v13 = vand.u32 2147483647, %v2641_v35  ;;  %v1273_v62 = vor.u32 %v1272_v24, %v1271_v43  ;;  %v1348_v53 = vand.u32 2139095040, %v2641_v35 }
 0x262   :  { %v1282_v60 = vsel %vm1274_vm14, %v1261_v10, %v1264_v21  ;;  %v1283_v6 = vsel %vm1277_vm15, %v1270_v26, 920167782  ;;  %v2653_v27 = vshll.u32 %v1250_v4, 8  ;;  %981 = vst.msk [vmem:[#allocation4] sm:$0xf] %vm2418_vm7, %v976_v40  ;;  %vm1275_vm1 = vcmp.lt.s32.totalorder %v2626_v33, 2  ;;  %v1137_v2 = vpop.f32.mrf.mxu1 }
 0x263   :  { %v1200_v55 = vadd.s32 536870912, %v1199_v47  ;;  %v1352_v17 = vand.u32 8388607, %v1345_v13  ;;  %vm1276_vm4 = vcmp.lt.s32.totalorder %v2626_v33, 3  ;;  %v1349_v54 = vshrl.u32 %v1348_v53, 23 }
 0x264   :  { %v1279_v8 = vsel %vm1277_vm15, %v1267_v37, 2102212464  ;;  %v1284_v58 = vsel %vm1276_vm4, %v1267_v37, %v1283_v6  ;;  %v1286_v28 = vsel %vm1274_vm14, %v1264_v21, %v1267_v37  ;;  %v1278_v9 = vsel %vm1274_vm14, %v1258_v0, %v1261_v10 }
 0x265   :  { %v2665_v48 = vshrl.u32 %v1200_v55, 30  ;;  %v1285_v49 = vsel %vm1275_vm1, %v1282_v60, %v1284_v58  ;;  %v1287_v20 = vsel %vm1277_vm15, %v1273_v62, 1326507024  ;;  %v1821_v4 = vadd.s32 4294967169, %v1349_v54 }
 0x266   :  { %v1288_v42 = vsel %vm1276_vm4, %v1270_v26, %v1287_v20  ;;  %v2674_v12 = vmul.u32.u64.low %v2653_v27, %v1285_v49  ;;  %v2675_v22 = vmul.u32.u64.high %v2653_v27, %v1285_v49, %v2674_v12  ;;  %v1353_v63 = vor.u32 8388608, %v1352_v17 }
 0x267   :  { %v1202_v56 = vshll.u32 %v2665_v48, 30  ;;  %v1280_v31 = vsel %vm1276_vm4, %v1264_v21, %v1279_v8  ;;  %v1289_v10 = vsel %vm1275_vm1, %v1286_v28, %v1288_v42  ;;  %v1355_v43 = vadd.s32 1, %v1821_v4 }
 0x268   :  { %v2682_v16 = vmul.u32.u64.low %v2653_v27, %v1289_v10  ;;  %v2683_v18 = vmul.u32.u64.high %v2653_v27, %v1289_v10, %v2682_v16  ;;  %v2688_v25 = vadd.f32 %v1134_v39, %v1009_v19  ;;  %v1281_v24 = vsel %vm1275_vm1, %v1278_v9, %v1280_v31 }
 0x269   :  { %v1203_v26 = vsub.s32 %v1199_v47, %v1202_v56  ;;  %vm1356_vm5 = vcmp.gt.s32.totalorder %v1355_v43, 0  ;;  %v1300_v21 = vadd.s32 1, %v2675_v22  ;;  %v1195_v0 = vadd.s32 %v2617_v1, %v2614_v15 }
 0x26a   :  { %v1357_v51 = vsel %vm1356_vm5, %v1355_v43, 0  ;;  %v1451_v29 = vand.u32 2139095040, %v2688_v25  ;;  %v2696_v40 = vshll.u32 %v1353_v63, 8  ;;  %vm1299_vm2 = vc.u32 %v2683_v18, %v2674_v12 }
 0x26b   :  { %v1205_v45 = vsub.s32 0, %v1203_v26  ;;  %v1359_v37 = vand.u32 31, %v1357_v51  ;;  %v1358_v19 = vshrl.u32 %v1357_v51, 5  ;;  %v1297_v33 = vmul.u32 %v2653_v27, %v1281_v24 }
 0x26c   :  { %v1448_v39 = vand.u32 2147483647, %v2688_v25  ;;  %v1301_v53 = vsel %vm1299_vm2, %v1300_v21, %v2675_v22  ;;  %v1452_v60 = vshrl.u32 %v1451_v29, 23  ;;  %vm2745_vm14 = vcmp.le.f32.partialorder %v1139_v5, 0.7853982 }
 0x26d   :  { %v1814_v14 = vmin.u32 %v1205_v45, %v1203_v26  ;;  %v1360_v47 = vsub.s32 32, %v1359_v37  ;;  %v1362_v62 = vshll.u32 %v2058_v30, %v1359_v37  ;;  %v1365_v15 = vshll.u32 %v2059_v32, %v1359_v37 }
 0x26e   :  { %v1368_v1 = vshll.u32 %v2060_v34, %v1359_v37  ;;  %v1371_v3 = vshll.u32 %v2061_v36, %v1359_v37  ;;  %v1374_v54 = vshll.u32 %v2062_v38, %v1359_v37  ;;  %vm1377_vm3 = vcmp.lt.s32.totalorder %v1358_v19, 1 }
 0x26f   :  { %v1207_v6 = vclz %v1814_v14  ;;  %v1363_v55 = vshrl.u32 %v2059_v32, %v1360_v47  ;;  %v1366_v17 = vshrl.u32 %v2060_v34, %v1360_v47  ;;  %v1369_v27 = vshrl.u32 %v2061_v36, %v1360_v47 }
 0x270   :  { %v1372_v58 = vshrl.u32 %v2062_v38, %v1360_v47  ;;  %v1375_v28 = vshrl.u32 %v2063_v46, %v1360_v47  ;;  %v1361_v2 = vshrl.u32 %v2058_v30, %v1360_v47  ;;  %vm1378_vm8 = vcmp.lt.s32.totalorder %v1358_v19, 2 }
 0x271   :  { %v1815_v8 = vadd.s32 4294967294, %v1207_v6  ;;  %v1364_v9 = vor.u32 %v1363_v55, %v1362_v62  ;;  %v1367_v49 = vor.u32 %v1366_v17, %v1365_v15  ;;  %v1370_v20 = vor.u32 %v1369_v27, %v1368_v1 }
 0x272   :  { %v1373_v4 = vor.u32 %v1372_v58, %v1371_v3  ;;  %v1376_v42 = vor.u32 %v1375_v28, %v1374_v54  ;;  %vm1379_vm11 = vcmp.lt.s32.totalorder %v1358_v19, 3  ;;  %vm1380_vm12 = vcmp.lt.s32.totalorder %v1358_v19, 4 }
 0x273   :  { %vm1816_vm6 = vcmp.lt.s32.totalorder %v1815_v8, 0  ;;  %v1381_v56 = vsel %vm1377_vm3, %v1361_v2, %v1364_v9  ;;  %v1382_v10 = vsel %vm1380_vm12, %v1370_v20, 2102212464  ;;  %v1385_v43 = vsel %vm1377_vm3, %v1364_v9, %v1367_v49 }
 0x274   :  { %v1210_v22 = vsel %vm1816_vm6, 0, %v1815_v8  ;;  %v1386_v24 = vsel %vm1380_vm12, %v1373_v4, 920167782  ;;  %v1389_v21 = vsel %vm1377_vm3, %v1367_v49, %v1370_v20  ;;  %v1390_v45 = vsel %vm1380_vm12, %v1376_v42, 1326507024 }
 0x275   :  { %v1211_v63 = vsub.s32 32, %v1210_v22  ;;  %v1215_v31 = vsub.s32 4294967266, %v1210_v22  ;;  %v1212_v16 = vshll.u32 %v1203_v26, %v1210_v22  ;;  %v1387_v37 = vsel %vm1379_vm11, %v1370_v20, %v1386_v24 }
 0x276   :  { %v1391_v14 = vsel %vm1379_vm11, %v1373_v4, %v1390_v45  ;;  %v1383_v47 = vsel %vm1379_vm11, %v1367_v49, %v1382_v10  ;;  %v1388_v62 = vsel %vm1378_vm8, %v1385_v43, %v1387_v37  ;;  %v1302_v15 = vadd.s32 %v1301_v53, %v1297_v33 }
 0x277   :  { %v1213_v51 = vshrl.u32 %v1195_v0, %v1211_v63  ;;  %v1216_v29 = vadd.s32 127, %v1215_v31  ;;  %v1392_v6 = vsel %vm1378_vm8, %v1389_v21, %v1391_v14  ;;  %v1825_v54 = vadd.s32 4294967169, %v1452_v60 }
 0x278   :  { %v2720_v55 = vmul.u32.u64.low %v2696_v40, %v1392_v6  ;;  %v2721_v17 = vmul.u32.u64.high %v2696_v40, %v1392_v6, %v2720_v55  ;;  %v2724_v26 = vmul.u32.u64.low %v2696_v40, %v1388_v62  ;;  %v2725_v27 = vmul.u32.u64.high %v2696_v40, %v1388_v62, %v2724_v26 }
 0x279   :  { %v1214_v1 = vor.u32 %v1213_v51, %v1212_v16  ;;  %v1217_v3 = vshll.u32 %v1216_v29, 23  ;;  %v1303_v0 = vadd.s32 536870912, %v1302_v15  ;;  %v1455_v58 = vand.u32 8388607, %v1448_v39 }
 0x27a   :  { %v1384_v28 = vsel %vm1378_vm8, %v1381_v56, %v1383_v47  ;;  %v1458_v53 = vadd.s32 1, %v1825_v54  ;;  %vm1402_vm10 = vc.u32 %v2721_v17, %v2724_v26  ;;  %v1403_v49 = vadd.s32 1, %v2725_v27 }
 0x27b   :  { %v1218_v8 = vor.u32 4788187, %v1217_v3  ;;  %v2731_v33 = vshrl.u32 %v1303_v0, 30  ;;  %v1221_v9 = vcvt.s32.f32 %v1214_v1  ;;  %v1400_v4 = vmul.u32 %v2696_v40, %v1384_v28 }
 0x27c   :  { %vm1459_vm13 = vcmp.gt.s32.totalorder %v1458_v53, 0  ;;  %v1456_v42 = vor.u32 8388608, %v1455_v58  ;;  %v1404_v19 = vsel %vm1402_vm10, %v1403_v49, %v2725_v27  ;;  %vm1141_vm15 = vcmp.lt.s32.totalorder %v2566_v61, 0 }
 0x27d   :  { %v1219_v2 = vand.u32 2147483647, %v1218_v8  ;;  %v1305_v20 = vshll.u32 %v2731_v33, 30  ;;  %v1460_v22 = vsel %vm1459_vm13, %v1458_v53, 0  ;;  %v1405_v10 = vadd.s32 %v1404_v19, %v1400_v4 }
 0x27e   :  { %v2741_v63 = vshrl.u32 %v1460_v22, 5  ;;  %v1462_v43 = vand.u32 31, %v1460_v22  ;;  %v1298_v40 = vadd.s32 %v2674_v12, %v2683_v18  ;;  %v2755_v29 = vshll.u32 %v1456_v42, 8 }
 0x27f   :  { %v1222_v60 = vmul.f32 %v1221_v9, %v1219_v2  ;;  %v2739_v56 = vsub.s32 %v1302_v15, %v1305_v20  ;;  %v1406_v45 = vadd.s32 536870912, %v1405_v10  ;;  %vm1244_vm11 = vcmp.lt.s32.totalorder %v2569_v23, 0 }
 0x280   :  { %v1463_v51 = vsub.s32 32, %v1462_v43  ;;  %v1465_v14 = vshll.u32 %v2058_v30, %v1462_v43  ;;  %vm1480_vm1 = vcmp.lt.s32.totalorder %v2741_v63, 1  ;;  %v1468_v47 = vshll.u32 %v2059_v32, %v1462_v43 }
 0x281   :  { %v1223_v31 = vxor.u32 2147483648, %v1222_v60  ;;  %v1308_v24 = vsub.s32 0, %v2739_v56  ;;  %v2763_v12 = vshrl.u32 %v1406_v45, 30  ;;  %v1471_v62 = vshll.u32 %v2060_v34, %v1462_v43 }
 0x282   :  { %v1466_v18 = vshrl.u32 %v2059_v32, %v1463_v51  ;;  %vm1482_vm4 = vcmp.lt.s32.totalorder %v2741_v63, 3  ;;  %v1469_v15 = vshrl.u32 %v2060_v34, %v1463_v51  ;;  %v1472_v1 = vshrl.u32 %v2061_v36, %v1463_v51 }
 0x283   :  { %v1224_v21 = vsel %vm1141_vm15, %v1223_v31, %v1222_v60  ;;  %v1818_v37 = vmin.u32 %v1308_v24, %v2739_v56  ;;  %vm1481_vm5 = vcmp.lt.s32.totalorder %v2741_v63, 2  ;;  %v1408_v3 = vshll.u32 %v2763_v12, 30 }
 0x284   :  { %v1227_v5 = vsel %vm2745_vm14, %v2566_v61, %v1224_v21  ;;  %v1467_v55 = vor.u32 %v1466_v18, %v1465_v14  ;;  %v1474_v27 = vshll.u32 %v2061_v36, %v1462_v43  ;;  %v1475_v0 = vshrl.u32 %v2062_v38, %v1463_v51 }
 0x285   :  { %1929 = vcosq.f32 %v1227_v5  ;;  %v1310_v6 = vclz %v1818_v37  ;;  %v1464_v54 = vshrl.u32 %v2058_v30, %v1463_v51  ;;  %v1470_v8 = vor.u32 %v1469_v15, %v1468_v47 }
 0x286   :  { %v1473_v58 = vor.u32 %v1472_v1, %v1471_v62  ;;  %v2776_v28 = vsub.s32 %v1405_v10, %v1408_v3  ;;  %v1476_v53 = vor.u32 %v1475_v0, %v1474_v27  ;;  %v1477_v34 = vshll.u32 %v2062_v38, %v1462_v43 }
 0x287   :  { %v1819_v32 = vadd.s32 4294967294, %v1310_v6  ;;  %v1478_v2 = vshrl.u32 %v2063_v46, %v1463_v51  ;;  %1931 = vsinq.f32 %v1227_v5  ;;  %vm1483_vm3 = vcmp.lt.s32.totalorder %v2741_v63, 4 }
 0x288   :  { %v1484_v36 = vsel %vm1480_vm1, %v1464_v54, %v1467_v55  ;;  %v1411_v9 = vsub.s32 0, %v2776_v28  ;;  %v1485_v20 = vsel %vm1483_vm3, %v1473_v58, 2102212464  ;;  %v1488_v38 = vsel %vm1480_vm1, %v1467_v55, %v1470_v8 }
 0x289   :  { %vm1820_vm2 = vcmp.lt.s32.totalorder %v1819_v32, 0  ;;  %v1479_v30 = vor.u32 %v1478_v2, %v1477_v34  ;;  %v1489_v22 = vsel %vm1483_vm3, %v1476_v53, 920167782  ;;  %v1492_v19 = vsel %vm1480_vm1, %v1470_v8, %v1473_v58 }
 0x28a   :  { %v1313_v49 = vsel %vm1820_vm2, 0, %v1819_v32  ;;  %v1822_v46 = vmin.u32 %v1411_v9, %v2776_v28  ;;  %v1490_v24 = vsel %vm1482_vm4, %v1473_v58, %v1489_v22  ;;  %v1486_v45 = vsel %vm1482_vm4, %v1470_v8, %v1485_v20 }
 0x28b   :  { %v1314_v60 = vsub.s32 32, %v1313_v49  ;;  %v1315_v4 = vshll.u32 %v2739_v56, %v1313_v49  ;;  %v1318_v42 = vsub.s32 4294967266, %v1313_v49  ;;  %v1493_v31 = vsel %vm1483_vm3, %v1479_v30, 1326507024 }
 0x28c   :  { %v1494_v21 = vsel %vm1482_vm4, %v1476_v53, %v1493_v31  ;;  %v1413_v56 = vclz %v1822_v46  ;;  %v1491_v51 = vsel %vm1481_vm5, %v1488_v38, %v1490_v24  ;;  %v1487_v3 = vsel %vm1481_vm5, %v1484_v36, %v1486_v45 }
 0x28d   :  { %v1316_v10 = vshrl.u32 %v1298_v40, %v1314_v60  ;;  %v1319_v43 = vadd.s32 127, %v1318_v42  ;;  %v1495_v5 = vsel %vm1481_vm5, %v1492_v19, %v1494_v21  ;;  %v1225_v58 = vsub.s32 4, %v2665_v48 }
 0x28e   :  { %v2801_v40 = vmul.u32.u64.low %v2755_v29, %v1495_v5  ;;  %v2802_v18 = vmul.u32.u64.high %v2755_v29, %v1495_v5, %v2801_v40  ;;  %v1823_v47 = vadd.s32 4294967294, %v1413_v56  ;;  %v1401_v53 = vadd.s32 %v2724_v26, %v2721_v17 }
 0x28f   :  { %v1317_v37 = vor.u32 %v1316_v10, %v1315_v4  ;;  %v1320_v14 = vshll.u32 %v1319_v43, 23  ;;  %v2805_v62 = vmul.u32.u64.low %v2755_v29, %v1491_v51  ;;  %v2806_v6 = vmul.u32.u64.high %v2755_v29, %v1491_v51, %v2805_v62 }
 0x290   :  { %vm1824_vm6 = vcmp.lt.s32.totalorder %v1823_v47, 0  ;;  %v1503_v2 = vmul.u32 %v2755_v29, %v1487_v3  ;;  %v1226_v4 = vsel %vm1141_vm15, %v1225_v58, %v2665_v48  ;;  %vm2826_vm12 = vcmp.le.f32.partialorder %v1242_v59, 0.7853982 }
 0x291   :  { %v1321_v15 = vor.u32 4788187, %v1320_v14  ;;  %v1416_v55 = vsel %vm1824_vm6, 0, %v1823_v47  ;;  %v1324_v0 = vcvt.s32.f32 %v1317_v37  ;;  %vm1505_vm8 = vc.u32 %v2802_v18, %v2805_v62 }
 0x292   :  { %v1930_v1 = vpop.eup %1929  ;;  %v1417_v32 = vsub.s32 32, %v1416_v55  ;;  %v1421_v54 = vsub.s32 4294967266, %v1416_v55  ;;  %v1506_v8 = vadd.s32 1, %v2806_v6  ;;  %v1418_v42 = vshll.u32 %v2776_v28, %v1416_v55 }
 0x293   :  { %v1322_v27 = vand.u32 2147483647, %v1321_v15  ;;  %v1228_v28 = vsel %vm2745_vm14, 0, %v1226_v4  ;;  %v1328_v59 = vsub.s32 4, %v2731_v33  ;;  %v1238_v56 = vxor.u32 2147483648, %v1930_v1 }
 0x294   :  { %v1932_v63 = vpop.eup %1931  ;;  %v1422_v36 = vadd.s32 127, %v1421_v54  ;;  %v1507_v9 = vsel %vm1505_vm8, %v1506_v8, %v2806_v6  ;;  %v1419_v49 = vshrl.u32 %v1401_v53, %v1417_v32  ;;  %v1232_v10 = vand.u32 3, %v1228_v28 }
 0x295   :  { %v1325_v34 = vmul.f32 %v1324_v0, %v1322_v27  ;;  %v1508_v20 = vadd.s32 %v1507_v9, %v1503_v2  ;;  %v1235_v21 = vxor.u32 2147483648, %v1932_v63  ;;  %v1329_v45 = vsel %vm1244_vm11, %v1328_v59, %v2731_v33 }
 0x296   :  { %v1423_v60 = vshll.u32 %v1422_v36, 23  ;;  %v1420_v22 = vor.u32 %v1419_v49, %v1418_v42  ;;  %vm1234_vm10 = vcmp.eq.s32.totalorder %v1232_v10, 0  ;;  %vm1237_vm13 = vcmp.eq.s32.totalorder %v1232_v10, 2 }
 0x297   :  { %v1326_v30 = vxor.u32 2147483648, %v1325_v34  ;;  %v1509_v29 = vadd.s32 536870912, %v1508_v20  ;;  %v1331_v37 = vsel %vm2826_vm12, 0, %v1329_v45  ;;  %v1236_v14 = vsel %vm1234_vm10, %v1930_v1, %v1235_v21 }
 0x298   :  { %v1424_v38 = vor.u32 4788187, %v1423_v60  ;;  %v1427_v43 = vcvt.s32.f32 %v1420_v22  ;;  %v1239_v40 = vsel %vm1237_vm13, %v1238_v56, %v1932_v63  ;;  %vm1233_vm14 = vcmp.lt.s32.totalorder %v1232_v10, 2 }
 0x299   :  { %v1327_v26 = vsel %vm1244_vm11, %v1326_v30, %v1325_v34  ;;  %v2835_v48 = vshrl.u32 %v1509_v29, 30  ;;  %v1335_v15 = vand.u32 3, %v1331_v37  ;;  %v1240_v3 = vsel %vm1233_vm14, %v1236_v14, %v1239_v40 }
 0x29a   :  { %v1330_v46 = vsel %vm2826_vm12, %v2569_v23, %v1327_v26  ;;  %v1425_v19 = vand.u32 2147483647, %v1424_v38  ;;  %vm2848_vm15 = vcmp.le.f32.partialorder %v1345_v13, 0.7853982  ;;  %vm1347_vm1 = vcmp.lt.s32.totalorder %v2641_v35, 0 }
 0x29b   :  { %1933 = vcosq.f32 %v1330_v46  ;;  %v1511_v31 = vshll.u32 %v2835_v48, 30  ;;  %vm1334_vm4 = vweird.f32 %v2569_v23  ;;  %vm1231_vm5 = vweird.f32 %v2566_v61 }
 0x29c   :  { %1935 = vsinq.f32 %v1330_v46  ;;  %v1428_v51 = vmul.f32 %v1427_v43, %v1425_v19  ;;  %v1241_v54 = vsel %vm1231_vm5, nan, %v1240_v3  ;;  %vm1337_vm3 = vcmp.eq.s32.totalorder %v1335_v15, 0 }
 0x29d   :  { %v1512_v24 = vsub.s32 %v1508_v20, %v1511_v31  ;;  %vm1340_vm6 = vcmp.eq.s32.totalorder %v1335_v15, 2  ;;  %v1504_v13 = vadd.s32 %v2805_v62, %v2802_v18  ;;  %vm1336_vm8 = vcmp.lt.s32.totalorder %v1335_v15, 2 }
 0x29e   :  { %v1429_v47 = vxor.u32 2147483648, %v1428_v51  ;;  %v1552_v36 = vpack.c.bf16 %v1241_v54, %v1241_v54  ;;  %v1431_v46 = vsub.s32 4, %v2763_v12  ;;  %vm1450_vm11 = vcmp.lt.s32.totalorder %v2688_v25, 0 }
 0x29f   :  { %v1514_v5 = vsub.s32 0, %v1512_v24  ;;  %vm2872_vm12 = vcmp.le.f32.partialorder %v1448_v39, 0.7853982  ;;  %v1534_v10 = vsub.s32 4, %v2835_v48 }
 0x2a0   :  { %v1430_v0 = vsel %vm1347_vm1, %v1429_v47, %v1428_v51  ;;  %v1557_v17 = vsel %vm161_vm0, %v1552_v36, 0  ;;  %v1432_v59 = vsel %vm1347_vm1, %v1431_v46, %v2763_v12 }
 0x2a1   :  { %v1826_v16 = vmin.u32 %v1514_v5, %v1512_v24  ;;  %v1433_v61 = vsel %vm2848_vm15, %v2641_v35, %v1430_v0  ;;  %v1434_v39 = vsel %vm2848_vm15, 0, %v1432_v59  ;;  %v1535_v21 = vsel %vm1450_vm11, %v1534_v10, %v2835_v48 }
 0x2a2   :  { %1937 = vcosq.f32 %v1433_v61  ;;  %v1537_v12 = vsel %vm2872_vm12, 0, %v1535_v21  ;;  %vm1437_vm15 = vweird.f32 %v2641_v35 }
 0x2a3   :  { %v1516_v6 = vclz %v1826_v16  ;;  %1939 = vsinq.f32 %v1433_v61  ;;  %v1541_v16 = vand.u32 3, %v1537_v12 }
 0x2a5   :  { %v1827_v55 = vadd.s32 4294967294, %v1516_v6  ;;  %vm1546_vm1 = vcmp.eq.s32.totalorder %v1541_v16, 2  ;;  %vm1542_vm5 = vcmp.lt.s32.totalorder %v1541_v16, 2 }
 0x2a7   :  { %vm1828_vm2 = vcmp.lt.s32.totalorder %v1827_v55, 0 }
 0x2a8   :  { %v1934_v27 = vpop.eup %1933  ;;  %v1519_v8 = vsel %vm1828_vm2, 0, %v1827_v55  ;;  %vm1540_vm2 = vweird.f32 %v2688_v25 }
 0x2a9   :  { %v1936_v1 = vpop.eup %1935  ;;  %v1341_v32 = vxor.u32 2147483648, %v1934_v27  ;;  %v1520_v53 = vsub.s32 32, %v1519_v8  ;;  %v1524_v34 = vsub.s32 4294967266, %v1519_v8  ;;  %v1521_v9 = vshll.u32 %v1512_v24, %v1519_v8 }
 0x2aa   :  { %v1338_v58 = vxor.u32 2147483648, %v1936_v1  ;;  %v1438_v24 = vand.u32 3, %v1434_v39 }
 0x2ab   :  { %v1342_v2 = vsel %vm1340_vm6, %v1341_v32, %v1936_v1  ;;  %v1522_v49 = vshrl.u32 %v1504_v13, %v1520_v53  ;;  %v1525_v30 = vadd.s32 127, %v1524_v34 }
 0x2ac   :  { %v1339_v63 = vsel %vm1337_vm3, %v1934_v27, %v1338_v58  ;;  %vm1440_vm10 = vcmp.eq.s32.totalorder %v1438_v24, 0  ;;  %vm1443_vm13 = vcmp.eq.s32.totalorder %v1438_v24, 2  ;;  %vm1439_vm14 = vcmp.lt.s32.totalorder %v1438_v24, 2 }
 0x2ad   :  { %v1343_v20 = vsel %vm1336_vm8, %v1339_v63, %v1342_v2  ;;  %v1523_v4 = vor.u32 %v1522_v49, %v1521_v9  ;;  %v1526_v18 = vshll.u32 %v1525_v30, 23  ;;  %v1551_v9 = vld [vmem:[#allocation5] sm:$0xf] }
 0x2ae   :  { %v1344_v60 = vsel %vm1334_vm4, nan, %v1343_v20  ;;  %vm1543_vm4 = vcmp.eq.s32.totalorder %v1541_v16, 0 }
 0x2af   :  { %v1553_v62 = vpack.c.bf16 %v1344_v60, %v1344_v60  ;;  %v1527_v42 = vor.u32 4788187, %v1526_v18  ;;  %v1530_v29 = vcvt.s32.f32 %v1523_v4  ;;  %v1938_v31 = vpop.eup %1937 }
 0x2b0   :  { %v1940_v43 = vpop.eup %1939  ;;  %v1444_v45 = vxor.u32 2147483648, %v1938_v31 }
 0x2b1   :  { %1829 = vmatprep.subr.msk.bf16.mxu0 %vm161_vm0, %v1553_v62  ;;  %v1528_v26 = vand.u32 2147483647, %v1527_v42  ;;  %v1441_v56 = vxor.u32 2147483648, %v1940_v43 }
 0x2b2   :  { %1583 = vmatpush1.bf16.msra.mxu0 %v1557_v17  ;;  %v1445_v5 = vsel %vm1443_vm13, %v1444_v45, %v1940_v43 }
 0x2b3   :  { %v1531_v38 = vmul.f32 %v1530_v29, %v1528_v26  ;;  %v1442_v51 = vsel %vm1440_vm10, %v1938_v31, %v1441_v56 }
 0x2b4   :  { %v1446_v37 = vsel %vm1439_vm14, %v1442_v51, %v1445_v5 }
 0x2b5   :  { %1830 = vmatmul.mubr.msk.bf16.vlgmr.msra.gmra.mxu0 %vm848_vm9, %v2507_v7  ;;  %v1532_v23 = vxor.u32 2147483648, %v1531_v38  ;;  %v1447_v48 = vsel %vm1437_vm15, nan, %v1446_v37 }
 0x2b6   :  { %v1554_v27 = vpack.c.bf16 %v1447_v48, %v1447_v48 }
 0x2b7   :  { %v1533_v28 = vsel %vm1450_vm11, %v1532_v23, %v1531_v38 }
 0x2b8   :  { %v1536_v19 = vsel %vm2872_vm12, %v2688_v25, %v1533_v28  ;;  %v1563_v0 = vsel %vm161_vm0, %v1554_v27, 0 }
 0x2b9   :  { %1941 = vcosq.f32 %v1536_v19 }
 0x2ba   :  { %1943 = vsinq.f32 %v1536_v19 }
 0x2c6   :  { %v1942_v14 = vpop.eup %1941 }
 0x2c7   :  { %v1944_v40 = vpop.eup %1943  ;;  %v1547_v47 = vxor.u32 2147483648, %v1942_v14 }
 0x2c8   :  { %v1544_v6 = vxor.u32 2147483648, %v1944_v40 }
 0x2c9   :  { %v1548_v15 = vsel %vm1546_vm1, %v1547_v47, %v1944_v40 }
 0x2ca   :  { %v1545_v3 = vsel %vm1543_vm4, %v1942_v14, %v1544_v6 }
 0x2cb   :  { %v1549_v55 = vsel %vm1542_vm5, %v1545_v3, %v1548_v15 }
 0x2cc   :  { %v1550_v33 = vsel %vm1540_vm2, nan, %v1549_v55 }
 0x2cd   :  { %v1555_v1 = vpack.c.bf16 %v1550_v33, %v1550_v33 }
 0x2cf   :  { %1831 = vmatprep.subr.msk.bf16.mxu1 %vm161_vm0, %v1555_v1  ;;  %vm1712_vm0 = vcmask 1040384  }
 0x2d0   :  { %1624 = vmatpush1.bf16.msra.mxu1 %v1563_v0 }
 0x2d3   :  { %1832 = vmatmul.mubr.msk.bf16.vlgmr.msra.gmra.mxu1 %vm848_vm9, %v2507_v7  ;;  %v1684_v7 = vld [vmem:[#allocation4] sm:$0xf] }
 0x2d4   :  { %v1685_v60 = vmul.f32 0.125, %v1684_v7 }
 0x375   :  { %v1602_v35 = vpop.f32.mrf.mxu0 }
 0x377   :  { %v1604_v32 = vpop.f32.mrf.mxu0 }
 0x378   :  { %v1654_v13 = vcombine.low %v1602_v35, %v1604_v32 }
 0x379   :  { %v1606_v54 = vpop.f32.mrf.mxu0 }
 0x37a   :  { %v1662_v2 = vrot.slane %v1654_v13, %v2577_v41 }
 0x37b   :  { %v1607_v8 = vpop.f32.mrf.mxu0 }
 0x393   :  { %v1643_v58 = vpop.f32.mrf.mxu1 }
 0x395   :  { %v1645_v53 = vpop.f32.mrf.mxu1 }
 0x396   :  { %v1655_v25 = vcombine.low %v1643_v58, %v1645_v53 }
 0x397   :  { %v1647_v34 = vpop.f32.mrf.mxu1 }
 0x398   :  { %v1669_v61 = vrot.slane %v1655_v25, %v2577_v41 }
 0x399   :  { %v1648_v63 = vpop.f32.mrf.mxu1 }
 0x39a   :  { %v1670_v36 = vcombine.low %v1662_v2, %v1669_v61 }
 0x39c   :  { %v1677_v49 = vrot.slane %v1670_v36, %v2577_v41 }
 0x39e   :  { %v1679_v30 = vadd.f32 %v1677_v49, %v1551_v9 }
 0x3a0   :  { %1680 = vst.msk [vmem:[#allocation5] sm:$0xf] %vm2418_vm7, %v1679_v30  ;;  %vm1718_vm7 = vcmask 942080  }
 0x3a7   :  { %v1686_v20 = vld [vmem:[#allocation5] sm:$0xf] }
 0x3a8   :  { %v1687_v4 = vmul.f32 0.125, %v1686_v20 }
 0x3aa   :  { %v1688_v18 = vsub.f32 %v1685_v60, %v1687_v4 }
 0x3ac   :  { %v1689_v62 = vmul.f32 0.06324555, %v1688_v18 }
 0x3ae   :  { %v1690_v42 = vmul.f32 %v1689_v62, %v1689_v62 }
 0x3b0   :  { %v1695_v17 = vrot.slane %v1690_v42, %v2138_v50  ;;  %v1699_v26 = vrot.slane %v1690_v42, %v2146_v52  ;;  %v1703_v29 = vrot.slane %v1690_v42, %v2155_v57  ;;  %v1707_v41 = vrot.slane %v1690_v42, %v2170_v11 }
 0x3b2   :  { %v1713_v38 = vsel %vm1712_vm0, %v1695_v17, 0.0  ;;  %v1714_v46 = vsel %vm1712_vm0, %v1699_v26, 0.0  ;;  %v1716_v23 = vsel %vm1712_vm0, %v1703_v29, 0.0  ;;  %v1719_v28 = vsel %vm1718_vm7, %v1707_v41, 0.0 }
 0x3b3   :  { %v1715_v44 = vadd.f32 %v1714_v46, %v1713_v38 }
 0x3b5   :  { %v1717_v22 = vadd.f32 %v1716_v23, %v1715_v44 }
 0x3b7   :  { %v1720_v59 = vadd.f32 %v1719_v28, %v1717_v22 }
 0x3b9   :  { %1721 = vadd.xlane.f32.xlu0 %v1720_v59 }
 0x442   :  { %v1722_v19 = vpop.xlane.xlu0 %1721 }
 0x443   :  { %v1723_v31 = vrot.slane %v1722_v19, 4 }
 0x445   :  { %v1724_v10 = vadd.f32 %v1723_v31, %v1722_v19 }
 0x447   :  { %v1725_v39 = vrot.slane %v1724_v10, 2 }
 0x449   :  { %v1726_v50 = vadd.f32 %v1725_v39, %v1724_v10 }
 0x44b   :  { %v1727_v43 = vrot.slane %v1726_v50, 1 }
 0x44d   :  { %v1728_v52 = vadd.f32 %v1727_v43, %v1726_v50 }
 0x44f   :  { %1881 = vpush %v1728_v52 }
 0x480   :  { %s1882_s5 = spop %1881 }
 0x481   :  { %v1730_v57 = vstv %s1882_s5 }
 0x482   :  { %1945 = vrsqrt.f32 %v1730_v57  ;;  %vm1733_vm9 = vcmp.eq.f32.partialorder %v1730_v57, inf  ;;  %v1736_v21 = vand.u32 2147483648, %v1730_v57  ;;  %vm1735_vm3 = vcmp.eq.f32.partialorder %v1730_v57, 0.0 }
 0x48f   :  { %v1946_v11 = vpop.eup %1945 }
 0x490   :  { %v1732_v24 = vmul.f32 %v1946_v11, %v1730_v57 }
 0x492   :  { %v1734_v56 = vsel %vm1733_vm9, %v1730_v57, %v1732_v24 }
 0x493   :  { %v1737_v45 = vsel %vm1735_vm3, %v1736_v21, %v1734_v56 }
 0x494   :  { %1883 = vpush %v1737_v45 }
 0x4c5   :  { %s1884_s18 = spop %1883 }
 0x4c6   :  { %1740 = sst [smem:[#allocation14]] %s1884_s18 }
 0x4c7   :  { %1748 = dma.smem_to_hbm %s2066_s19, 16, %s2912_s6, [#allocation8]  }
 0x4c8   :  { %2049 = dma.done.wait [#allocation8], 16  }
 0x4c9   :  { %2050 = vsyncadd [#allocation8], 4294967280 }
 0x4ca   :  { %1752 = sfence }
 0x4cb   :  { %1753 = vsyncpa [#allocation7], 1 }
 0x4cc   :  { %1754 = vsyncpa [#allocation10], 1 }
 0x4cd   :  { %1755 = vsyncpa [#allocation13], 1 }
 0x4ce   :  { %1756 = vsyncpa [#allocation8], 1 }

</bundles_post_ra>
